<compile_context>
chip_gen: v5e
topology: v5e:2x2
jax: 0.10.0
libtpu: 0.0.40
codegen_flags: <defaults>
</compile_context>

<pallas_src>
import jax
import jax.numpy as jnp
from jax.experimental import pallas as pl
from jax.experimental.pallas import tpu as pltpu

LANE = 128


def _round_up(a, b):
    return (a + b - 1) // b * b


def _gate(inp, diag, w1, b1, w2, b2):
    """SignEqGateLayer: out = (diag*inp) * sigmoid(MLP(|inp|)) + inp   (residual=True)."""
    h = jnp.dot(jnp.abs(inp), w1, preferred_element_type=jnp.float32) + b1
    h = jnp.maximum(h, 0.0)                                         # ReLU
    z = jnp.dot(h, w2, preferred_element_type=jnp.float32) + b2
    # sigmoid = 1 / (1 + exp(-z)) : exp and approx reciprocal both go to the EUP slot.
    gate = pl.reciprocal(1.0 + jnp.exp(-z), approx=True)
    return (diag * inp) * gate + inp


def sign_dss_kernel(cnt_ref, x_ref, invdeg_ref,
                    d1_ref, w11_ref, b11_ref, w12_ref, b12_ref,
                    d2_ref, w21_ref, b21_ref, w22_ref, b22_ref,
                    out_ref, acc_ref):
    i = pl.program_id(0)
    k = pl.program_id(1)
    tm = out_ref.shape[0]
    tk = cnt_ref.shape[1]

    @pl.when(k == 0)
    def _():
        acc_ref[...] = jnp.zeros_like(acc_ref)
        # net1 gate + residual only need the raw row tile -> compute up front (spreads the
        # epilogue across the K loop).  out_ref's block index is constant over k, so it stays
        # VMEM-resident until the last K step.
        row0 = pl.multiple_of(i * tm, LANE)
        x_rows = x_ref[pl.ds(row0, tm), :]
        x1 = _gate(x_rows, d1_ref[...], w11_ref[...], b11_ref[...],
                   w12_ref[...], b12_ref[...])
        out_ref[...] = x_rows + x1                                  # orig_x + net1(x)

    # Tiled count aggregation: acc += C[i_tile, k_tile] @ x[k_tile, :]
    # C is streamed in bf16 (exact for integer counts < 256) and upcast in-register; the
    # accumulation stays f32 so the mean aggregation is exact after the 1/deg scale below.
    col0 = pl.multiple_of(k * tk, LANE)
    xk = x_ref[pl.ds(col0, tk), :]
    acc_ref[...] += jnp.dot(cnt_ref[...].astype(jnp.float32), xk,
                            preferred_element_type=jnp.float32)

    @pl.when(k == pl.num_programs(1) - 1)
    def _():
        aggr = acc_ref[...] * invdeg_ref[...]                       # row-wise mean normalization
        x2 = _gate(aggr, d2_ref[...], w21_ref[...], b21_ref[...],
                   w22_ref[...], b22_ref[...])
        out_ref[...] += x2                                          # + net2(mean-aggr(x))


def sign_dss_layer(x, counts, params, *, tile_m=512, tile_k=4096):
    """x: [N, num_eigs] f32, counts: [N, N] f32 dense edge-count matrix (counts[i, j] = #edges j->i)."""
    N, E = x.shape
    H = params["w11"].shape[1]
    Ep = _round_up(E, LANE)            # lane-dense feature width (32 -> 128)
    Hp = _round_up(H, LANE)            # lane-dense hidden width  (92 -> 128)

    # Row tile: ensure >= 2 row tiles whenever N allows so the "parallel" axis feeds both of
    # v7x's TensorCores (v5e/v6e single-TC are unaffected).
    tm = min(tile_m, _round_up(max(-(-N // 2), 1), LANE))
    # Reduction tile: decoupled from tm; large tk => fewer ~0.35us grid-step overheads and
    # bigger, more bandwidth-efficient adjacency DMAs.
    tk = min(tile_k, _round_up(N, LANE))

    Nr = _round_up(N, tm)              # padded rows (output / aggregation targets)
    Nc = _round_up(N, tk)              # padded cols (aggregation sources)
    Nx = max(Nr, Nc)                   # x must cover both row and K slicing

    def pad2(a, r, c, dtype=jnp.float32):
        return jnp.zeros((r, c), dtype).at[:a.shape[0], :a.shape[1]].set(a.astype(dtype))

    # Integer counts are exactly representable in bf16 for multiplicities < 256.
    cnt_bf16 = pad2(counts, Nr, Nc, jnp.bfloat16)
    deg = counts.sum(axis=1)
    inv_deg = pad2((1.0 / jnp.maximum(deg, 1.0))[:, None], Nr, 1)   # isolated nodes aggregate to 0

    xp = pad2(x, Nx, Ep)
    d1, w11, b11 = pad2(params["d1"], 1, Ep), pad2(params["w11"], Ep, Hp), pad2(params["b11"], 1, Hp)
    w12, b12     = pad2(params["w12"], Hp, Ep), pad2(params["b12"], 1, Ep)
    d2, w21, b21 = pad2(params["d2"], 1, Ep), pad2(params["w21"], Ep, Hp), pad2(params["b21"], 1, Hp)
    w22, b22     = pad2(params["w22"], Hp, Ep), pad2(params["b22"], 1, Ep)

    grid = (Nr // tm, Nc // tk)

    def resident(shape):               # stays in VMEM for the whole grid (constant block index)
        return pl.BlockSpec(shape, lambda i, k: (0, 0))

    out = pl.pallas_call(
        sign_dss_kernel,
        out_shape=jax.ShapeDtypeStruct((Nr, Ep), jnp.float32),
        grid_spec=pltpu.PrefetchScalarGridSpec(
            num_scalar_prefetch=0,
            grid=grid,
            in_specs=[
                pl.BlockSpec((tm, tk), lambda i, k: (i, k)),        # bf16 count tile (only streamed operand)
                resident((Nx, Ep)),                                 # x, fully VMEM-resident, sliced in-kernel
                pl.BlockSpec((tm, 1), lambda i, k: (i, 0)),         # per-row 1/deg column for this row tile
                resident((1, Ep)), resident((Ep, Hp)), resident((1, Hp)),
                resident((Hp, Ep)), resident((1, Ep)),
                resident((1, Ep)), resident((Ep, Hp)), resident((1, Hp)),
                resident((Hp, Ep)), resident((1, Ep)),
            ],
            out_specs=pl.BlockSpec((tm, Ep), lambda i, k: (i, 0)),
            scratch_shapes=[pltpu.VMEM((tm, Ep), jnp.float32)],     # f32 aggregation accumulator
        ),
        compiler_params=pltpu.CompilerParams(
            dimension_semantics=("parallel", "arbitrary"),          # rows parallel (v7x 2 TCs), K reduce
            vmem_limit_bytes=48 * 1024 * 1024,                      # safe on v7x's 64 MiB as well as v5e/v6e
        ),
    )(cnt_bf16, xp, inv_deg, d1, w11, b11, w12, b12, d2, w21, b21, w22, b22)

    return out[:N, :E]


def build_count_adjacency(edge_index, num_nodes):
    """Dense edge-count matrix: C[i, j] = multiplicity(j -> i)."""
    src, dst = edge_index[0], edge_index[1]
    return jnp.zeros((num_nodes, num_nodes), jnp.float32).at[dst, src].add(1.0)


def init_params(key, num_eigs, hidden=92):
    """Deterministic parameter init matching the module's shapes (synthetic, not a checkpoint)."""
    ks = jax.random.split(key, 10)
    s1 = 1.0 / jnp.sqrt(num_eigs)
    s2 = 1.0 / jnp.sqrt(hidden)
    return {
        "d1":  1.0 + 0.1 * jax.random.normal(ks[0], (1, num_eigs), jnp.float32),
        "w11": jax.random.normal(ks[1], (num_eigs, hidden), jnp.float32) * s1,
        "b11": jax.random.normal(ks[2], (1, hidden), jnp.float32) * 0.1,
        "w12": jax.random.normal(ks[3], (hidden, num_eigs), jnp.float32) * s2,
        "b12": jax.random.normal(ks[4], (1, num_eigs), jnp.float32) * 0.1,
        "d2":  1.0 + 0.1 * jax.random.normal(ks[5], (1, num_eigs), jnp.float32),
        "w21": jax.random.normal(ks[6], (num_eigs, hidden), jnp.float32) * s1,
        "b21": jax.random.normal(ks[7], (1, hidden), jnp.float32) * 0.1,
        "w22": jax.random.normal(ks[8], (hidden, num_eigs), jnp.float32) * s2,
        "b22": jax.random.normal(ks[9], (1, num_eigs), jnp.float32) * 0.1,
    }


def reference_jax(x, counts, p):
    """Plain-JAX forward matching SignDSSLayer(activation='none', residual=True, use_conv=True)."""
    deg = counts.sum(axis=1, keepdims=True)
    adj_mean = counts / jnp.maximum(deg, 1.0)

    def gate(inp, d, w1, b1, w2, b2):
        h = jax.nn.relu(jnp.abs(inp) @ w1 + b1)
        g = jax.nn.sigmoid(h @ w2 + b2)
        return (d * inp) * g + inp

    x1 = gate(x, p["d1"], p["w11"], p["b11"], p["w12"], p["b12"])
    aggr = adj_mean @ x
    x2 = gate(aggr, p["d2"], p["w21"], p["b21"], p["w22"], p["b22"])
    return x + (x1 + x2)


if __name__ == "__main__":
    NUM_EIGS, HIDDEN = 32, 92
    key = jax.random.PRNGKey(0)
    k1, k2 = jax.random.split(key)

    def run_case(case_key, n_nodes, n_edges, **tiles):
        kx, ke, kp = jax.random.split(case_key, 3)
        x = jax.random.normal(kx, (n_nodes, NUM_EIGS), jnp.float32)
        edge_index = jax.random.randint(ke, (2, n_edges), 0, n_nodes)   # [2, num_edges]
        params = init_params(kp, NUM_EIGS, HIDDEN)
        counts = build_count_adjacency(edge_index, n_nodes)             # plain-JAX glue
        out = jax.block_until_ready(sign_dss_layer(x, counts, params, **tiles))
        ref = reference_jax(x, counts, params)
        assert out.shape == (n_nodes, NUM_EIGS)
        # Tolerance absorbs only the EUP approximate-reciprocal sigmoid; counts in bf16 are exact
        # and everything else is f32.
        assert jnp.allclose(out, ref, atol=1e-2, rtol=1e-2), f"mismatch vs JAX reference (N={n_nodes})"

    # Single-tile path: grid (1, 1), exercises the combined k==0 / k==last step.
    run_case(k1, 8, 24)
    # Multi-tile path: 3 row tiles x 3 K tiles, exercises the K-reduction init/finalize,
    # the resident-x pl.ds slicing and the multi-row-tile (megacore) split.
    run_case(k2, 300, 900, tile_m=128, tile_k=128)

    print("KERNEL_OK")
</pallas_src>

<mosaic_0001>
module attributes {stable_mosaic.version = 11 : i64} {
  func.func @sign_dss_kernel(%arg0: i32, %arg1: i32, %arg2: memref<128x128xbf16, #tpu.memory_space<vmem>>, %arg3: memref<128x128xf32, #tpu.memory_space<vmem>>, %arg4: memref<128x1xf32, #tpu.memory_space<vmem>>, %arg5: memref<1x128xf32, #tpu.memory_space<vmem>>, %arg6: memref<128x128xf32, #tpu.memory_space<vmem>>, %arg7: memref<1x128xf32, #tpu.memory_space<vmem>>, %arg8: memref<128x128xf32, #tpu.memory_space<vmem>>, %arg9: memref<1x128xf32, #tpu.memory_space<vmem>>, %arg10: memref<1x128xf32, #tpu.memory_space<vmem>>, %arg11: memref<128x128xf32, #tpu.memory_space<vmem>>, %arg12: memref<1x128xf32, #tpu.memory_space<vmem>>, %arg13: memref<128x128xf32, #tpu.memory_space<vmem>>, %arg14: memref<1x128xf32, #tpu.memory_space<vmem>>, %arg15: memref<128x128xf32, #tpu.memory_space<vmem>>, %arg16: memref<128x128xf32, #tpu.memory_space<vmem>>) attributes {dimension_semantics = [#tpu.dimension_semantics<parallel>, #tpu.dimension_semantics<arbitrary>], iteration_bounds = array<i64: 1, 1>, scalar_prefetch = 0 : i64, scratch_operands = 1 : i64, tpu.core_type = #tpu.core_type<tc>, window_params = [{transform_indices = @transform_0, window_bounds = array<i64: 128, 128>}, {pipeline_mode = #tpu.pipeline_mode<synchronous>, transform_indices = @transform_1, window_bounds = array<i64: 128, 128>}, {transform_indices = @transform_2, window_bounds = array<i64: 128, 1>}, {pipeline_mode = #tpu.pipeline_mode<synchronous>, transform_indices = @transform_3, window_bounds = array<i64: 1, 128>}, {pipeline_mode = #tpu.pipeline_mode<synchronous>, transform_indices = @transform_4, window_bounds = array<i64: 128, 128>}, {pipeline_mode = #tpu.pipeline_mode<synchronous>, transform_indices = @transform_5, window_bounds = array<i64: 1, 128>}, {pipeline_mode = #tpu.pipeline_mode<synchronous>, transform_indices = @transform_6, window_bounds = array<i64: 128, 128>}, {pipeline_mode = #tpu.pipeline_mode<synchronous>, transform_indices = @transform_7, window_bounds = array<i64: 1, 128>}, {pipeline_mode = #tpu.pipeline_mode<synchronous>, transform_indices = @transform_8, window_bounds = array<i64: 1, 128>}, {pipeline_mode = #tpu.pipeline_mode<synchronous>, transform_indices = @transform_9, window_bounds = array<i64: 128, 128>}, {pipeline_mode = #tpu.pipeline_mode<synchronous>, transform_indices = @transform_10, window_bounds = array<i64: 1, 128>}, {pipeline_mode = #tpu.pipeline_mode<synchronous>, transform_indices = @transform_11, window_bounds = array<i64: 128, 128>}, {pipeline_mode = #tpu.pipeline_mode<synchronous>, transform_indices = @transform_12, window_bounds = array<i64: 1, 128>}, {transform_indices = @transform_13, window_bounds = array<i64: 128, 128>}]} {
    %c0_i32 = arith.constant 0 : i32
    %0 = arith.cmpi eq, %arg1, %c0_i32 : i32
    %1 = arith.extui %0 : i1 to i32
    %c0_i32_0 = arith.constant 0 : i32
    %2 = arith.cmpi ne, %1, %c0_i32_0 : i32
    scf.if %2 {
      %cst_9 = arith.constant 0.000000e+00 : f32
      %16 = vector.broadcast %cst_9 : f32 to vector<128x128xf32>
      %c0_10 = arith.constant 0 : index
      %c0_11 = arith.constant 0 : index
      %17 = vector.load %arg16[%c0_10, %c0_11] : memref<128x128xf32, #tpu.memory_space<vmem>>, vector<128x128xf32>
      tpu.vector_store %arg16[%c0_10, %c0_11], %16 {strides = array<i32>} : memref<128x128xf32, #tpu.memory_space<vmem>>, vector<128x128xf32>,
      %c128_i32_12 = arith.constant 128 : i32
      %18 = arith.muli %arg0, %c128_i32_12 : i32
      %19 = tpu.assume_multiple %18, 128 : i32
      %20 = arith.index_cast %19 : i32 to index
      %c0_13 = arith.constant 0 : index
      %21 = vector.load %arg3[%20, %c0_13] : memref<128x128xf32, #tpu.memory_space<vmem>>, vector<128x128xf32>
      %c0_14 = arith.constant 0 : index
      %c0_15 = arith.constant 0 : index
      %22 = vector.load %arg5[%c0_14, %c0_15] : memref<1x128xf32, #tpu.memory_space<vmem>>, vector<1x128xf32>
      %c0_16 = arith.constant 0 : index
      %c0_17 = arith.constant 0 : index
      %23 = vector.load %arg6[%c0_16, %c0_17] : memref<128x128xf32, #tpu.memory_space<vmem>>, vector<128x128xf32>
      %c0_18 = arith.constant 0 : index
      %c0_19 = arith.constant 0 : index
      %24 = vector.load %arg7[%c0_18, %c0_19] : memref<1x128xf32, #tpu.memory_space<vmem>>, vector<1x128xf32>
      %c0_20 = arith.constant 0 : index
      %c0_21 = arith.constant 0 : index
      %25 = vector.load %arg8[%c0_20, %c0_21] : memref<128x128xf32, #tpu.memory_space<vmem>>, vector<128x128xf32>
      %c0_22 = arith.constant 0 : index
      %c0_23 = arith.constant 0 : index
      %26 = vector.load %arg9[%c0_22, %c0_23] : memref<1x128xf32, #tpu.memory_space<vmem>>, vector<1x128xf32>
      %27 = math.absf %21 : vector<128x128xf32>
      %cst_24 = arith.constant dense<0.000000e+00> : vector<128x128xf32>
      %28 = tpu.matmul %27, %23, %cst_24 {dimension_numbers = #tpu.dot_dimension_numbers<[1], [0], [0], [1], [0, 0, 1, 1], [], []>} : vector<128x128xf32>, vector<128x128xf32>, vector<128x128xf32> -> vector<128x128xf32>
      %29 = vector.broadcast %24 : vector<1x128xf32> to vector<128x128xf32>
      %30 = arith.addf %28, %29 : vector<128x128xf32>
      %cst_25 = arith.constant 0.000000e+00 : f32
      %31 = vector.broadcast %cst_25 : f32 to vector<128x128xf32>
      %32 = arith.maximumf %30, %31 : vector<128x128xf32>
      %cst_26 = arith.constant dense<0.000000e+00> : vector<128x128xf32>
      %33 = tpu.matmul %32, %25, %cst_26 {dimension_numbers = #tpu.dot_dimension_numbers<[1], [0], [0], [1], [0, 0, 1, 1], [], []>} : vector<128x128xf32>, vector<128x128xf32>, vector<128x128xf32> -> vector<128x128xf32>
      %34 = vector.broadcast %26 : vector<1x128xf32> to vector<128x128xf32>
      %35 = arith.addf %33, %34 : vector<128x128xf32>
      %cst_27 = arith.constant 0.000000e+00 : f32
      %36 = vector.broadcast %cst_27 : f32 to vector<128x128xf32>
      %37 = arith.subf %36, %35 : vector<128x128xf32>
      %38 = math.exp %37 : vector<128x128xf32>
      %cst_28 = arith.constant 1.000000e+00 : f32
      %39 = vector.broadcast %cst_28 : f32 to vector<128x128xf32>
      %40 = arith.addf %39, %38 : vector<128x128xf32>
      %41 = tpu.reciprocal %40 {approx = true} : vector<128x128xf32> -> vector<128x128xf32>
      %42 = vector.broadcast %22 : vector<1x128xf32> to vector<128x128xf32>
      %43 = arith.mulf %42, %21 : vector<128x128xf32>
      %44 = arith.mulf %43, %41 : vector<128x128xf32>
      %45 = arith.addf %44, %21 : vector<128x128xf32>
      %46 = arith.addf %21, %45 : vector<128x128xf32>
      %c0_29 = arith.constant 0 : index
      %c0_30 = arith.constant 0 : index
      %47 = vector.load %arg15[%c0_29, %c0_30] : memref<128x128xf32, #tpu.memory_space<vmem>>, vector<128x128xf32>
      tpu.vector_store %arg15[%c0_29, %c0_30], %46 {strides = array<i32>} : memref<128x128xf32, #tpu.memory_space<vmem>>, vector<128x128xf32>,
    } else {
    }
    %c128_i32 = arith.constant 128 : i32
    %3 = arith.muli %arg1, %c128_i32 : i32
    %4 = tpu.assume_multiple %3, 128 : i32
    %5 = arith.index_cast %4 : i32 to index
    %c0 = arith.constant 0 : index
    %6 = vector.load %arg3[%5, %c0] : memref<128x128xf32, #tpu.memory_space<vmem>>, vector<128x128xf32>
    %c0_1 = arith.constant 0 : index
    %c0_2 = arith.constant 0 : index
    %7 = vector.load %arg16[%c0_1, %c0_2] : memref<128x128xf32, #tpu.memory_space<vmem>>, vector<128x128xf32>
    %c0_3 = arith.constant 0 : index
    %c0_4 = arith.constant 0 : index
    %8 = vector.load %arg2[%c0_3, %c0_4] : memref<128x128xbf16, #tpu.memory_space<vmem>>, vector<128x128xbf16>
    %9 = arith.extf %8 : vector<128x128xbf16> to vector<128x128xf32>
    %cst = arith.constant dense<0.000000e+00> : vector<128x128xf32>
    %10 = tpu.matmul %9, %6, %cst {dimension_numbers = #tpu.dot_dimension_numbers<[1], [0], [0], [1], [0, 0, 1, 1], [], []>} : vector<128x128xf32>, vector<128x128xf32>, vector<128x128xf32> -> vector<128x128xf32>
    %11 = arith.addf %7, %10 : vector<128x128xf32>
    %c0_5 = arith.constant 0 : index
    %c0_6 = arith.constant 0 : index
    %12 = vector.load %arg16[%c0_5, %c0_6] : memref<128x128xf32, #tpu.memory_space<vmem>>, vector<128x128xf32>
    tpu.vector_store %arg16[%c0_5, %c0_6], %11 {strides = array<i32>} : memref<128x128xf32, #tpu.memory_space<vmem>>, vector<128x128xf32>,
    %c0_i32_7 = arith.constant 0 : i32
    %13 = arith.cmpi eq, %arg1, %c0_i32_7 : i32
    %14 = arith.extui %13 : i1 to i32
    %c0_i32_8 = arith.constant 0 : i32
    %15 = arith.cmpi ne, %14, %c0_i32_8 : i32
    scf.if %15 {
      %c0_9 = arith.constant 0 : index
      %c0_10 = arith.constant 0 : index
      %16 = vector.load %arg16[%c0_9, %c0_10] : memref<128x128xf32, #tpu.memory_space<vmem>>, vector<128x128xf32>
      %c0_11 = arith.constant 0 : index
      %c0_12 = arith.constant 0 : index
      %17 = vector.load %arg4[%c0_11, %c0_12] : memref<128x1xf32, #tpu.memory_space<vmem>>, vector<128x1xf32>
      %18 = vector.broadcast %17 : vector<128x1xf32> to vector<128x128xf32>
      %19 = arith.mulf %16, %18 : vector<128x128xf32>
      %c0_13 = arith.constant 0 : index
      %c0_14 = arith.constant 0 : index
      %20 = vector.load %arg10[%c0_13, %c0_14] : memref<1x128xf32, #tpu.memory_space<vmem>>, vector<1x128xf32>
      %c0_15 = arith.constant 0 : index
      %c0_16 = arith.constant 0 : index
      %21 = vector.load %arg11[%c0_15, %c0_16] : memref<128x128xf32, #tpu.memory_space<vmem>>, vector<128x128xf32>
      %c0_17 = arith.constant 0 : index
      %c0_18 = arith.constant 0 : index
      %22 = vector.load %arg12[%c0_17, %c0_18] : memref<1x128xf32, #tpu.memory_space<vmem>>, vector<1x128xf32>
      %c0_19 = arith.constant 0 : index
      %c0_20 = arith.constant 0 : index
      %23 = vector.load %arg13[%c0_19, %c0_20] : memref<128x128xf32, #tpu.memory_space<vmem>>, vector<128x128xf32>
      %c0_21 = arith.constant 0 : index
      %c0_22 = arith.constant 0 : index
      %24 = vector.load %arg14[%c0_21, %c0_22] : memref<1x128xf32, #tpu.memory_space<vmem>>, vector<1x128xf32>
      %25 = math.absf %19 : vector<128x128xf32>
      %cst_23 = arith.constant dense<0.000000e+00> : vector<128x128xf32>
      %26 = tpu.matmul %25, %21, %cst_23 {dimension_numbers = #tpu.dot_dimension_numbers<[1], [0], [0], [1], [0, 0, 1, 1], [], []>} : vector<128x128xf32>, vector<128x128xf32>, vector<128x128xf32> -> vector<128x128xf32>
      %27 = vector.broadcast %22 : vector<1x128xf32> to vector<128x128xf32>
      %28 = arith.addf %26, %27 : vector<128x128xf32>
      %cst_24 = arith.constant 0.000000e+00 : f32
      %29 = vector.broadcast %cst_24 : f32 to vector<128x128xf32>
      %30 = arith.maximumf %28, %29 : vector<128x128xf32>
      %cst_25 = arith.constant dense<0.000000e+00> : vector<128x128xf32>
      %31 = tpu.matmul %30, %23, %cst_25 {dimension_numbers = #tpu.dot_dimension_numbers<[1], [0], [0], [1], [0, 0, 1, 1], [], []>} : vector<128x128xf32>, vector<128x128xf32>, vector<128x128xf32> -> vector<128x128xf32>
      %32 = vector.broadcast %24 : vector<1x128xf32> to vector<128x128xf32>
      %33 = arith.addf %31, %32 : vector<128x128xf32>
      %cst_26 = arith.constant 0.000000e+00 : f32
      %34 = vector.broadcast %cst_26 : f32 to vector<128x128xf32>
      %35 = arith.subf %34, %33 : vector<128x128xf32>
      %36 = math.exp %35 : vector<128x128xf32>
      %cst_27 = arith.constant 1.000000e+00 : f32
      %37 = vector.broadcast %cst_27 : f32 to vector<128x128xf32>
      %38 = arith.addf %37, %36 : vector<128x128xf32>
      %39 = tpu.reciprocal %38 {approx = true} : vector<128x128xf32> -> vector<128x128xf32>
      %40 = vector.broadcast %20 : vector<1x128xf32> to vector<128x128xf32>
      %41 = arith.mulf %40, %19 : vector<128x128xf32>
      %42 = arith.mulf %41, %39 : vector<128x128xf32>
      %43 = arith.addf %42, %19 : vector<128x128xf32>
      %c0_28 = arith.constant 0 : index
      %c0_29 = arith.constant 0 : index
      %44 = vector.load %arg15[%c0_28, %c0_29] : memref<128x128xf32, #tpu.memory_space<vmem>>, vector<128x128xf32>
      %45 = arith.addf %44, %43 : vector<128x128xf32>
      %c0_30 = arith.constant 0 : index
      %c0_31 = arith.constant 0 : index
      %46 = vector.load %arg15[%c0_30, %c0_31] : memref<128x128xf32, #tpu.memory_space<vmem>>, vector<128x128xf32>
      tpu.vector_store %arg15[%c0_30, %c0_31], %45 {strides = array<i32>} : memref<128x128xf32, #tpu.memory_space<vmem>>, vector<128x128xf32>,
    } else {
    }
    return
  }
  func.func @transform_0(%arg0: i32, %arg1: i32) -> (i32, i32) {
    %c0_i32 = arith.constant 0 : i32
    return %arg0, %arg1 : i32, i32
  }
  func.func @transform_1(%arg0: i32, %arg1: i32) -> (i32, i32) {
    %c0_i32 = arith.constant 0 : i32
    %c0_i32_0 = arith.constant 0 : i32
    %c0_i32_1 = arith.constant 0 : i32
    return %c0_i32, %c0_i32_0 : i32, i32
  }
  func.func @transform_2(%arg0: i32, %arg1: i32) -> (i32, i32) {
    %c0_i32 = arith.constant 0 : i32
    %c0_i32_0 = arith.constant 0 : i32
    return %arg0, %c0_i32 : i32, i32
  }
  func.func @transform_3(%arg0: i32, %arg1: i32) -> (i32, i32) {
    %c0_i32 = arith.constant 0 : i32
    %c0_i32_0 = arith.constant 0 : i32
    %c0_i32_1 = arith.constant 0 : i32
    return %c0_i32, %c0_i32_0 : i32, i32
  }
  func.func @transform_4(%arg0: i32, %arg1: i32) -> (i32, i32) {
    %c0_i32 = arith.constant 0 : i32
    %c0_i32_0 = arith.constant 0 : i32
    %c0_i32_1 = arith.constant 0 : i32
    return %c0_i32, %c0_i32_0 : i32, i32
  }
  func.func @transform_5(%arg0: i32, %arg1: i32) -> (i32, i32) {
    %c0_i32 = arith.constant 0 : i32
    %c0_i32_0 = arith.constant 0 : i32
    %c0_i32_1 = arith.constant 0 : i32
    return %c0_i32, %c0_i32_0 : i32, i32
  }
  func.func @transform_6(%arg0: i32, %arg1: i32) -> (i32, i32) {
    %c0_i32 = arith.constant 0 : i32
    %c0_i32_0 = arith.constant 0 : i32
    %c0_i32_1 = arith.constant 0 : i32
    return %c0_i32, %c0_i32_0 : i32, i32
  }
  func.func @transform_7(%arg0: i32, %arg1: i32) -> (i32, i32) {
    %c0_i32 = arith.constant 0 : i32
    %c0_i32_0 = arith.constant 0 : i32
    %c0_i32_1 = arith.constant 0 : i32
    return %c0_i32, %c0_i32_0 : i32, i32
  }
  func.func @transform_8(%arg0: i32, %arg1: i32) -> (i32, i32) {
    %c0_i32 = arith.constant 0 : i32
    %c0_i32_0 = arith.constant 0 : i32
    %c0_i32_1 = arith.constant 0 : i32
    return %c0_i32, %c0_i32_0 : i32, i32
  }
  func.func @transform_9(%arg0: i32, %arg1: i32) -> (i32, i32) {
    %c0_i32 = arith.constant 0 : i32
    %c0_i32_0 = arith.constant 0 : i32
    %c0_i32_1 = arith.constant 0 : i32
    return %c0_i32, %c0_i32_0 : i32, i32
  }
  func.func @transform_10(%arg0: i32, %arg1: i32) -> (i32, i32) {
    %c0_i32 = arith.constant 0 : i32
    %c0_i32_0 = arith.constant 0 : i32
    %c0_i32_1 = arith.constant 0 : i32
    return %c0_i32, %c0_i32_0 : i32, i32
  }
  func.func @transform_11(%arg0: i32, %arg1: i32) -> (i32, i32) {
    %c0_i32 = arith.constant 0 : i32
    %c0_i32_0 = arith.constant 0 : i32
    %c0_i32_1 = arith.constant 0 : i32
    return %c0_i32, %c0_i32_0 : i32, i32
  }
  func.func @transform_12(%arg0: i32, %arg1: i32) -> (i32, i32) {
    %c0_i32 = arith.constant 0 : i32
    %c0_i32_0 = arith.constant 0 : i32
    %c0_i32_1 = arith.constant 0 : i32
    return %c0_i32, %c0_i32_0 : i32, i32
  }
  func.func @transform_13(%arg0: i32, %arg1: i32) -> (i32, i32) {
    %c0_i32 = arith.constant 0 : i32
    %c0_i32_0 = arith.constant 0 : i32
    return %arg0, %c0_i32 : i32, i32
  }
}

</mosaic_0001>

<bundles_post_ra>
// kernel: tpu_custom_call.1
= control target key start
LH: loop header
LB: loop body
LE: loop exit
PB: predicated region body
PF: predicated region fallthrough
CT: control target
= control target key end

     0   :  { %18 = vsyncpa [#allocation4], 0  ;;  %s2177_s0 = inlined_call_operand.hbm [shape: bf16[128,128], index: 0, kind: input, shape index: {}]   ;;  %s2178_s1 = inlined_call_operand.vmem [shape: f32[128,128], index: 1, kind: input, shape index: {}]   ;;  %s2179_s2 = inlined_call_operand.vmem [shape: f32[128,1], index: 2, kind: input, shape index: {}]   ;;  %s2180_s3 = inlined_call_operand.vmem [shape: f32[1,128], index: 3, kind: input, shape index: {}]   ;;  %s2181_s4 = inlined_call_operand.hbm [shape: f32[128,128], index: 4, kind: input, shape index: {}]   ;;  %s2182_s5 = inlined_call_operand.vmem [shape: f32[1,128], index: 5, kind: input, shape index: {}]   ;;  %s2183_s6 = inlined_call_operand.hbm [shape: f32[128,128], index: 6, kind: input, shape index: {}]   ;;  %s2184_s7 = inlined_call_operand.vmem [shape: f32[1,128], index: 7, kind: input, shape index: {}]   ;;  %s2185_s8 = inlined_call_operand.vmem [shape: f32[1,128], index: 8, kind: input, shape index: {}]   ;;  %s2186_s9 = inlined_call_operand.hbm [shape: f32[128,128], index: 9, kind: input, shape index: {}]   ;;  %s2187_s10 = inlined_call_operand.vmem [shape: f32[1,128], index: 10, kind: input, shape index: {}]   ;;  %s2188_s11 = inlined_call_operand.hbm [shape: f32[128,128], index: 11, kind: input, shape index: {}]   ;;  %s2189_s12 = inlined_call_operand.vmem [shape: f32[1,128], index: 12, kind: input, shape index: {}]   ;;  %s2190_s13 = inlined_call_operand.hbm [shape: f32[128,128], index: 13, kind: output, shape index: {}]  }
   0x1   :  { %19 = vsyncpa [#allocation7], 0 }
   0x2   :  { %20 = vsyncpa [#allocation10], 0  ;;  %s45_s27 = sshll.u32 %s2181_s4, 4  ;;  %s46_s27 = int_to_ptr.hbm [resolvable:$true] %s45_s27 }
   0x3   :  { %21 = vsyncpa [#allocation5], 0  ;;  %s1627_s28 = smov [#allocation6]   ;;  %s77_s15 = sshll.u32 %s2186_s9, 4  ;;  %s78_s15 = int_to_ptr.hbm [resolvable:$true] %s77_s15 }
   0x4   :  { %s47_s29 = sshll.u32 %s1627_s28, 4  ;;  %s1628_s16 = smov 128   ;;  %s48_s29 = int_to_ptr.vmem [resolvable:$true] %s47_s29 }
   0x5   :  { %s1629_s17 = smov 8   ;;  %s1630_s18 = smov [#allocation9]  }
   0x6   :  { %53 = dma.hbm_to_vmem [thread:$0]  %s46_s27, 2048, %s48_s29, [#allocation7], %s1628_s16, %s1628_s16, %s1629_s17  }
   0x7   :  { %s79_s19 = sshll.u32 %s1630_s18, 4  ;;  %s26_s21 = sshll.u32 %s2177_s0, 4  ;;  %s80_s19 = int_to_ptr.vmem [resolvable:$true] %s79_s19  ;;  %s27_s21 = int_to_ptr.hbm [resolvable:$true] %s26_s21 }
   0x8   :  { %85 = dma.hbm_to_vmem [thread:$0]  %s78_s15, 2048, %s80_s19, [#allocation10], %s1628_s16, %s1628_s16, %s1629_s17  }
   0x9   :  { %s1631_s9 = smov [#allocation3]   ;;  %s60_s25 = sshll.u32 %s2183_s6, 4  ;;  %s61_s25 = int_to_ptr.hbm [resolvable:$true] %s60_s25 }
   0xa   :  { %s28_s22 = sshll.u32 %s1631_s9, 4  ;;  %s1632_s26 = smov 64   ;;  %s29_s22 = int_to_ptr.vmem [resolvable:$true] %s28_s22 }
   0xb   :  { %s1633_s27 = smov 4   ;;  %s1634_s28 = smov [#allocation8]  }
   0xc   :  { %34 = dma.hbm_to_vmem [thread:$0]  %s27_s21, 1024, %s29_s22, [#allocation4], %s1632_s26, %s1632_s26, %s1633_s27  }
   0xd   :  { %s62_s29 = sshll.u32 %s1634_s28, 4  ;;  %s92_s14 = sshll.u32 %s2188_s11, 4  ;;  %s63_s29 = int_to_ptr.vmem [resolvable:$true] %s62_s29  ;;  %s93_s14 = int_to_ptr.hbm [resolvable:$true] %s92_s14 }
   0xe   :  { %68 = dma.hbm_to_vmem [thread:$0]  %s61_s25, 2048, %s63_s29, [#allocation7], %s1628_s16, %s1628_s16, %s1629_s17  }
   0xf   :  { %s1635_s15 = smov [#allocation11]  }
  0x10   :  { %s94_s18 = sshll.u32 %s1635_s15, 4  ;;  %s95_s18 = int_to_ptr.vmem [resolvable:$true] %s94_s18 }
  0x11   :  { %100 = dma.hbm_to_vmem [thread:$0]  %s93_s14, 2048, %s95_s18, [#allocation10], %s1628_s16, %s1628_s16, %s1629_s17  }
  0x12   :  { %1619 = dma.done.wait [#allocation4], 1024  }
  0x13   :  { %1620 = vsyncadd [#allocation4], 4294966272 }
  0x14   :  { %1621 = dma.done.wait [#allocation7], 4096  }
  0x15   :  { %1622 = vsyncadd [#allocation7], 4294963200 }
  0x16   :  { %1623 = dma.done.wait [#allocation10], 4096  }
  0x17   :  { %1624 = vsyncadd [#allocation10], 4294963200  ;;  %v177_v0 = vld [vmem:[#allocation6 + $0x78] sm:$0xff]  ;;  %v176_v1 = vld [vmem:[#allocation6 + $0x70] sm:$0xff]  ;;  %v1636_v6 = vmov 0   ;;  %s1209_s14 = sshll.u32 %s2190_s13, 4  ;;  %s1210_s14 = int_to_ptr.hbm [resolvable:$true] %s1209_s14 }
  0x18   :  { %215 = vmatpush.msra.mxu0 %v177_v0  ;;  %1264 = vmatpush.msra.mxu2 %v177_v0  ;;  %v175_v2 = vld [vmem:[#allocation6 + $0x68] sm:$0xff]  ;;  %v174_v3 = vld [vmem:[#allocation6 + $0x60] sm:$0xff]  ;;  %v173_v4 = vld [vmem:[#allocation6 + $0x58] sm:$0xff] }
  0x19   :  { %1263 = vmatpush.msra.mxu1 %v177_v0  ;;  %1265 = vmatpush.msra.mxu3 %v177_v0  ;;  %v172_v5 = vld [vmem:[#allocation6 + $0x50] sm:$0xff]  ;;  %v171_v7 = vld [vmem:[#allocation6 + $0x48] sm:$0xff]  ;;  %v709_v8 = vld [vmem:[%s2179_s2] sm:$0xff] }
  0x1a   :  { %216 = vmatpush.msra.mxu0 %v176_v1  ;;  %1267 = vmatpush.msra.mxu2 %v176_v1  ;;  %v170_v9 = vld [vmem:[#allocation6 + $0x40] sm:$0xff]  ;;  %v169_v10 = vld [vmem:[#allocation6 + $0x38] sm:$0xff]  ;;  %v1738_v11 = vld [vmem:[#allocation6 + $0x30] sm:$0xff] }
  0x1b   :  { %1266 = vmatpush.msra.mxu1 %v176_v1  ;;  %1268 = vmatpush.msra.mxu3 %v176_v1  ;;  %v710_v12 = vld [vmem:[%s2179_s2 + $0x8] sm:$0xff]  ;;  %v1747_v14 = vld [vmem:[#allocation6 + $0x20] sm:$0xff]  ;;  %v1752_v15 = vld [vmem:[#allocation6 + $0x18] sm:$0xff] }
  0x1c   :  { %217 = vmatpush.msra.mxu0 %v175_v2  ;;  %1270 = vmatpush.msra.mxu2 %v175_v2  ;;  %v1743_v13 = vld [vmem:[#allocation6 + $0x28] sm:$0xff]  ;;  %v1757_v16 = vld [vmem:[#allocation6 + $0x10] sm:$0xff]  ;;  %v1768_v18 = vld [vmem:[%s2178_s1] sm:$0xff] }
  0x1d   :  { %1269 = vmatpush.msra.mxu1 %v175_v2  ;;  %1271 = vmatpush.msra.mxu3 %v175_v2  ;;  %v715_v17 = vld [vmem:[%s2179_s2 + $0x30] sm:$0xff]  ;;  %v1773_v19 = vld [vmem:[%s2178_s1 + $0x40] sm:$0xff]  ;;  %v1775_v20 = vld [vmem:[#allocation6 + $0x8] sm:$0xff]  ;;  %v196_v22 = vand.u32 2147483647, %v1768_v18 }
  0x1e   :  { %218 = vmatpush.msra.mxu0 %v174_v3  ;;  %1273 = vmatpush.msra.mxu2 %v174_v3  ;;  %v1780_v21 = vld [vmem:[#allocation6] sm:$0xff]  ;;  %v204_v23 = vand.u32 2147483647, %v1773_v19  ;;  %v1795_v25 = vld [vmem:[%s2178_s1 + $0x78] sm:$0xff]  ;;  %v1804_v27 = vld [vmem:[%s2178_s1 + $0x70] sm:$0xff] }
  0x1f   :  { %1272 = vmatpush.msra.mxu1 %v174_v3  ;;  %1322 = vset.pattern.permute.xlu0 %v1636_v6  ;;  %v1790_v24 = vld [vmem:[%s2178_s1 + $0x20] sm:$0xff]  ;;  %v711_v28 = vld [vmem:[%s2179_s2 + $0x10] sm:$0xff]  ;;  %v718_v29 = vld [vmem:[%s2179_s2 + $0x48] sm:$0xff] }
  0x20   :  { %219 = vmatpush.msra.mxu0 %v173_v4  ;;  %1276 = vmatpush.msra.mxu2 %v173_v4  ;;  %v200_v26 = vand.u32 2147483647, %v1790_v24  ;;  %v1816_v30 = vld [vmem:[%s2178_s1 + $0x8] sm:$0xff]  ;;  %v1831_v33 = vld [vmem:[%s2178_s1 + $0x60] sm:$0xff]  ;;  %v540_v37 = vld [vmem:[%s2178_s1 + $0x58] sm:$0xff] }
  0x21   :  { %727 = vperm.xlu0 %1322, %v709_v8   ;;  %1275 = vmatpush.msra.mxu1 %v173_v4  ;;  %v154_v31 = vld [vmem:[%s2178_s1 + $0x48] sm:$0xff]  ;;  %v197_v34 = vand.u32 2147483647, %v1816_v30  ;;  %v539_v39 = vld [vmem:[%s2178_s1 + $0x50] sm:$0xff]  ;;  %v712_v40 = vld [vmem:[%s2179_s2 + $0x18] sm:$0xff] }
  0x22   :  { %220 = vmatpush.msra.mxu0 %v172_v5  ;;  %1279 = vmatpush.msra.mxu2 %v172_v5  ;;  %v1825_v32 = vld [vmem:[%s2178_s1 + $0x68] sm:$0xff]  ;;  %v205_v35 = vand.u32 2147483647, %v154_v31  ;;  %v721_v41 = vld [vmem:[%s2179_s2 + $0x60] sm:$0xff]  ;;  %v1856_v42 = vld [vmem:[%s2178_s1 + $0x10] sm:$0xff] }
  0x23   :  { %1278 = vmatpush.msra.mxu1 %v172_v5  ;;  %1323 = vset.pattern.permute.xlu1 %v1636_v6  ;;  %v534_v36 = vld [vmem:[%s2178_s1 + $0x28] sm:$0xff]  ;;  %v198_v43 = vand.u32 2147483647, %v1856_v42  ;;  %v206_v44 = vand.u32 2147483647, %v539_v39  ;;  %v535_v45 = vld [vmem:[%s2178_s1 + $0x30] sm:$0xff] }
  0x24   :  { %221 = vmatpush.msra.mxu0 %v171_v7  ;;  %1282 = vmatpush.msra.mxu2 %v171_v7  ;;  %v201_v38 = vand.u32 2147483647, %v534_v36  ;;  %v536_v46 = vld [vmem:[%s2178_s1 + $0x38] sm:$0xff]  ;;  %v202_v47 = vand.u32 2147483647, %v535_v45  ;;  %v719_v54 = vld [vmem:[%s2179_s2 + $0x50] sm:$0xff] }
  0x25   :  { %1281 = vmatpush.msra.mxu1 %v171_v7  ;;  %1324 = vset.pattern.permute.xlu2 %v1636_v6  ;;  %v716_v48 = vld [vmem:[%s2179_s2 + $0x38] sm:$0xff]  ;;  %v207_v52 = vand.u32 2147483647, %v540_v37  ;;  %v203_v53 = vand.u32 2147483647, %v536_v46  ;;  %v1225_v55 = vld [vmem:[#allocation3] sm:$0xff]  }
  0x26   :  { %222 = vmatpush.msra.mxu0 %v170_v9  ;;  %1285 = vmatpush.msra.mxu2 %v170_v9  ;;  %v724_v49 = vld [vmem:[%s2179_s2 + $0x78] sm:$0xff]  ;;  %v1226_v56 = vunpack.c.l.bf16 %v1225_v55  ;;  %v722_v57 = vld [vmem:[%s2179_s2 + $0x68] sm:$0xff]  ;;  %v1227_v58 = vunpack.c.h.bf16 %v1225_v55  ;;  %v713_v59 = vld [vmem:[%s2179_s2 + $0x20] sm:$0xff] }
  0x27   :  { %1284 = vmatpush.msra.mxu1 %v170_v9  ;;  %1274 = vmatpush.msra.mxu3 %v174_v3  ;;  %v1878_v50 = vld [vmem:[%s2178_s1 + $0x18] sm:$0xff]  ;;  %v1256_v60 = vld [vmem:[#allocation3 + $0x8] sm:$0xff]   ;;  %v717_v0 = vld [vmem:[%s2179_s2 + $0x40] sm:$0xff] }
  0x28   :  { %223 = vmatpush.msra.mxu0 %v169_v10  ;;  %1288 = vmatpush.msra.mxu2 %v169_v10  ;;  %v199_v51 = vand.u32 2147483647, %v1878_v50  ;;  %v1230_v61 = vunpack.c.l.bf16 %v1256_v60  ;;  %v714_v62 = vld [vmem:[%s2179_s2 + $0x28] sm:$0xff]  ;;  %v1231_v63 = vunpack.c.h.bf16 %v1256_v60  ;;  %v1257_v1 = vld [vmem:[#allocation3 + $0x10] sm:$0xff]   ;;  %v720_v3 = vld [vmem:[%s2179_s2 + $0x58] sm:$0xff] }
  0x29   :  { %732 = vperm.xlu0 %1322, %v710_v12   ;;  %1287 = vmatpush.msra.mxu1 %v169_v10  ;;  %v1234_v2 = vunpack.c.l.bf16 %v1257_v1  ;;  %v192_v6 = vld [vmem:[#allocation8 + $0x68] sm:$0xff]  ;;  %v723_v8 = vld [vmem:[%s2179_s2 + $0x70] sm:$0xff] }
  0x2a   :  { %224 = vmatpush.msra.mxu0 %v1738_v11  ;;  %1291 = vmatpush.msra.mxu2 %v1738_v11  ;;  %v189_v12 = vld [vmem:[#allocation8 + $0x50] sm:$0xff] }
  0x2b   :  { %1290 = vmatpush.msra.mxu1 %v1738_v11  ;;  %1277 = vmatpush.msra.mxu3 %v173_v4  ;;  %v194_v4 = vld [vmem:[#allocation8 + $0x78] sm:$0xff] }
  0x2c   :  { %225 = vmatpush.msra.mxu0 %v1743_v13  ;;  %1294 = vmatpush.msra.mxu2 %v1743_v13 }
  0x2d   :  { %1293 = vmatpush.msra.mxu1 %v1743_v13  ;;  %1280 = vmatpush.msra.mxu3 %v172_v5  ;;  %v193_v5 = vld [vmem:[#allocation8 + $0x70] sm:$0xff] }
  0x2e   :  { %226 = vmatpush.msra.mxu0 %v1747_v14  ;;  %1297 = vmatpush.msra.mxu2 %v1747_v14 }
  0x2f   :  { %1296 = vmatpush.msra.mxu1 %v1747_v14  ;;  %1283 = vmatpush.msra.mxu3 %v171_v7  ;;  %v1235_v7 = vunpack.c.h.bf16 %v1257_v1  ;;  %v822_v1 = vld [vmem:[#allocation9] sm:$0xff] }
  0x30   :  { %227 = vmatpush.msra.mxu0 %v1752_v15  ;;  %1300 = vmatpush.msra.mxu2 %v1752_v15 }
  0x31   :  { %757 = vperm.xlu0 %1322, %v715_v17   ;;  %1299 = vmatpush.msra.mxu1 %v1752_v15  ;;  %v185_v17 = vld [vmem:[#allocation8 + $0x30] sm:$0xff] }
  0x32   :  { %228 = vmatpush.msra.mxu0 %v1757_v16  ;;  %1303 = vmatpush.msra.mxu2 %v1757_v16 }
  0x33   :  { %1302 = vmatpush.msra.mxu1 %v1757_v16  ;;  %1286 = vmatpush.msra.mxu3 %v170_v9  ;;  %v191_v9 = vld [vmem:[#allocation8 + $0x60] sm:$0xff] }
  0x34   :  { %229 = vmatpush.msra.mxu0 %v1775_v20  ;;  %1306 = vmatpush.msra.mxu2 %v1775_v20 }
  0x35   :  { %1305 = vmatpush.msra.mxu1 %v1775_v20  ;;  %1289 = vmatpush.msra.mxu3 %v169_v10  ;;  %v190_v10 = vld [vmem:[#allocation8 + $0x58] sm:$0xff] }
  0x36   :  { %230 = vmatpush.msra.mxu0 %v1780_v21  ;;  %1309 = vmatpush.msra.mxu2 %v1780_v21 }
  0x37   :  { %231 = vmatmul.f32.vlgmr.msra.gmra.mxu0 %v196_v22  ;;  %255 = vmatmul.f32.vlgmr.msra.gmra.mxu2 %v204_v23  ;;  %v182_v22 = vld [vmem:[#allocation8 + $0x18] sm:$0xff]  ;;  %v1259_v23 = vld [vmem:[#allocation3 + $0x20] sm:$0xff]  }
  0x38   :  { %593 = vmatpush.msrb.mxu2 %v1795_v25  ;;  %1308 = vmatpush.msra.mxu1 %v1780_v21 }
  0x39   :  { %243 = vmatmul.f32.vlgmr.msra.gmra.mxu1 %v200_v26  ;;  %737 = vperm.xlu1 %1323, %v711_v28   ;;  %v181_v26 = vld [vmem:[#allocation8 + $0x10] sm:$0xff]  ;;  %v180_v28 = vld [vmem:[#allocation8 + $0x8] sm:$0xff] }
  0x3a   :  { %594 = vmatpush.msrb.mxu2 %v1804_v27  ;;  %772 = vperm.xlu0 %1322, %v718_v29   ;;  %v179_v29 = vld [vmem:[#allocation8] sm:$0xff] }
  0x3b   :  { %1292 = vmatpush.msra.mxu3 %v1738_v11  ;;  %747 = vperm.xlu2 %1324, %v713_v59   ;;  %v1258_v11 = vld [vmem:[#allocation3 + $0x18] sm:$0xff]   ;;  %v824_v59 = vld [vmem:[#allocation9 + $0x10] sm:$0xff] }
  0x3c   :  { %595 = vmatpush.msrb.mxu2 %v1825_v32  ;;  %299 = vmatpush.msrb.mxu1 %v194_v4 }
  0x3d   :  { %1295 = vmatpush.msra.mxu3 %v1743_v13  ;;  %v1238_v13 = vunpack.c.l.bf16 %v1258_v11 }
  0x3e   :  { %596 = vmatpush.msrb.mxu2 %v1831_v33  ;;  %300 = vmatpush.msrb.mxu1 %v193_v5 }
  0x3f   :  { %234 = vmatmul.f32.gmra.mxu0 %v197_v34  ;;  %258 = vmatmul.f32.gmra.mxu2 %v205_v35  ;;  %v208_v34 = vand.u32 2147483647, %v1831_v33  ;;  %v837_v35 = vld [vmem:[#allocation9 + $0x78] sm:$0xff] }
  0x40   :  { %597 = vmatpush.msrb.mxu2 %v540_v37  ;;  %1298 = vmatpush.msra.mxu3 %v1747_v14  ;;  %v188_v14 = vld [vmem:[#allocation8 + $0x48] sm:$0xff]  ;;  %v836_v37 = vld [vmem:[#allocation9 + $0x70] sm:$0xff] }
  0x41   :  { %246 = vmatmul.f32.gmra.mxu1 %v201_v38  ;;  %742 = vperm.xlu1 %1323, %v712_v40   ;;  %v834_v40 = vld [vmem:[#allocation9 + $0x60] sm:$0xff] }
  0x42   :  { %598 = vmatpush.msrb.mxu2 %v539_v39  ;;  %787 = vperm.xlu0 %1322, %v721_v41   ;;  %v835_v39 = vld [vmem:[#allocation9 + $0x68] sm:$0xff]  ;;  %v209_v41 = vand.u32 2147483647, %v1825_v32  ;;  %v1915_v32 = vld [vmem:[%s2182_s5] ss:$0 sm:$0xff] }
  0x43   :  { %1301 = vmatpush.msra.mxu3 %v1752_v15  ;;  %752 = vperm.xlu2 %1324, %v714_v62   ;;  %v187_v15 = vld [vmem:[#allocation8 + $0x40] sm:$0xff]  ;;  %v823_v62 = vld [vmem:[#allocation9 + $0x8] sm:$0xff] }
  0x44   :  { %599 = vmatpush.msrb.mxu2 %v154_v31  ;;  %301 = vmatpush.msrb.mxu1 %v192_v6  ;;  %v1243_v31 = vunpack.c.h.bf16 %v1259_v23 }
  0x45   :  { %1304 = vmatpush.msra.mxu3 %v1757_v16  ;;  %v186_v16 = vld [vmem:[#allocation8 + $0x38] sm:$0xff] }
  0x46   :  { %600 = vmatpush.msrb.mxu2 %v1773_v19  ;;  %302 = vmatpush.msrb.mxu1 %v191_v9  ;;  %v1239_v19 = vunpack.c.h.bf16 %v1258_v11 }
  0x47   :  { %237 = vmatmul.f32.gmra.mxu0 %v198_v43  ;;  %261 = vmatmul.f32.gmra.mxu2 %v206_v44  ;;  %v833_v43 = vld [vmem:[#allocation9 + $0x58] sm:$0xff]  ;;  %v832_v44 = vld [vmem:[#allocation9 + $0x50] sm:$0xff] }
  0x48   :  { %601 = vmatpush.msrb.mxu2 %v536_v46  ;;  %1307 = vmatpush.msra.mxu3 %v1775_v20  ;;  %v184_v20 = vld [vmem:[#allocation8 + $0x28] sm:$0xff]  ;;  %v830_v46 = vld [vmem:[#allocation9 + $0x40] sm:$0xff] }
  0x49   :  { %249 = vmatmul.f32.gmra.mxu1 %v202_v47  ;;  %762 = vperm.xlu1 %1323, %v716_v48   ;;  %v210_v47 = vand.u32 2147483647, %v1804_v27  ;;  %v829_v48 = vld [vmem:[#allocation9 + $0x38] sm:$0xff]  ;;  %v826_v27 = vld [vmem:[#allocation9 + $0x20] sm:$0xff] }
  0x4a   :  { %602 = vmatpush.msrb.mxu2 %v535_v45  ;;  %802 = vperm.xlu0 %1322, %v724_v49   ;;  %v831_v45 = vld [vmem:[#allocation9 + $0x48] sm:$0xff]  ;;  %v1261_v49 = vld [vmem:[#allocation3 + $0x30] sm:$0xff]  }
  0x4b   :  { %1310 = vmatpush.msra.mxu3 %v1780_v21  ;;  %767 = vperm.xlu2 %1324, %v717_v0   ;;  %v183_v21 = vld [vmem:[#allocation8 + $0x20] sm:$0xff] }
  0x4c   :  { %603 = vmatpush.msrb.mxu2 %v534_v36  ;;  %303 = vmatpush.msrb.mxu1 %v190_v10  ;;  %v1260_v36 = vld [vmem:[#allocation3 + $0x28] sm:$0xff]  }
  0x4d   :  { %267 = vmatmul.f32.vlgmr.msra.gmra.mxu3 %v208_v34  ;;  %v1246_v38 = vunpack.c.l.bf16 %v1260_v36  ;;  %v1247_v33 = vunpack.c.h.bf16 %v1260_v36 }
  0x4e   :  { %604 = vmatpush.msrb.mxu2 %v1790_v24  ;;  %304 = vmatpush.msrb.mxu1 %v189_v12  ;;  %v1242_v24 = vunpack.c.l.bf16 %v1259_v23 }
  0x4f   :  { %240 = vmatmul.f32.gmra.mxu0 %v199_v51  ;;  %264 = vmatmul.f32.gmra.mxu2 %v207_v52  ;;  %v828_v51 = vld [vmem:[#allocation9 + $0x30] sm:$0xff]  ;;  %v1250_v52 = vunpack.c.l.bf16 %v1261_v49 }
  0x50   :  { %605 = vmatpush.msrb.mxu2 %v1878_v50  ;;  %305 = vmatpush.msrb.mxu1 %v188_v14 }
  0x51   :  { %252 = vmatmul.f32.gmra.mxu1 %v203_v53  ;;  %777 = vperm.xlu1 %1323, %v719_v54   ;;  %v827_v53 = vld [vmem:[#allocation9 + $0x28] sm:$0xff] }
  0x52   :  { %606 = vmatpush.msrb.mxu2 %v1856_v42  ;;  %306 = vmatpush.msrb.mxu1 %v187_v15 }
  0x53   :  { %782 = vperm.xlu2 %1324, %v720_v3   ;;  %875 = vmatpush.msrb.mxu3 %v837_v35 }
  0x54   :  { %607 = vmatpush.msrb.mxu2 %v1816_v30  ;;  %307 = vmatpush.msrb.mxu1 %v186_v16 }
  0x55   :  { %876 = vmatpush.msrb.mxu3 %v836_v37 }
  0x56   :  { %608 = vmatpush.msrb.mxu2 %v1768_v18  ;;  %308 = vmatpush.msrb.mxu1 %v185_v17 }
  0x57   :  { %609 = vmatmul.f32.vlgmr.msrb.gmra.mxu2 %v1226_v56  ;;  %877 = vmatpush.msrb.mxu3 %v835_v39  ;;  %v211_v56 = vand.u32 2147483647, %v1795_v25  ;;  %v1262_v25 = vld [vmem:[#allocation3 + $0x38] sm:$0xff]  }
  0x58   :  { %309 = vmatpush.msrb.mxu1 %v184_v20  ;;  %270 = vmatmul.f32.gmra.mxu3 %v209_v41  ;;  %v1254_v4 = vunpack.c.l.bf16 %v1262_v25  ;;  %v1255_v10 = vunpack.c.h.bf16 %v1262_v25 }
  0x59   :  { %792 = vperm.xlu1 %1323, %v722_v57   ;;  %878 = vmatpush.msrb.mxu3 %v834_v40  ;;  %v825_v57 = vld [vmem:[#allocation9 + $0x18] sm:$0xff] }
  0x5a   :  { %310 = vmatpush.msrb.mxu1 %v183_v21 }
  0x5b   :  { %797 = vperm.xlu2 %1324, %v723_v8   ;;  %879 = vmatpush.msrb.mxu3 %v833_v43 }
  0x5c   :  { %311 = vmatpush.msrb.mxu1 %v182_v22 }
  0x5d   :  { %880 = vmatpush.msrb.mxu3 %v832_v44 }
  0x5e   :  { %312 = vmatpush.msrb.mxu1 %v181_v26 }
  0x5f   :  { %612 = vmatmul.f32.gmra.mxu2 %v1227_v58  ;;  %881 = vmatpush.msrb.mxu3 %v831_v45 }
  0x60   :  { %313 = vmatpush.msrb.mxu1 %v180_v28  ;;  %273 = vmatmul.f32.gmra.mxu3 %v210_v47 }
  0x61   :  { %882 = vmatpush.msrb.mxu3 %v830_v46 }
  0x62   :  { %314 = vmatpush.msrb.mxu1 %v179_v29 }
  0x63   :  { %883 = vmatpush.msrb.mxu3 %v829_v48 }
  0x65   :  { %884 = vmatpush.msrb.mxu3 %v828_v51 }
  0x67   :  { %615 = vmatmul.f32.gmra.mxu2 %v1230_v61  ;;  %885 = vmatpush.msrb.mxu3 %v827_v53  ;;  %v1251_v61 = vunpack.c.h.bf16 %v1261_v49 }
  0x68   :  { %276 = vmatmul.f32.gmra.mxu3 %v211_v56 }
  0x69   :  { %886 = vmatpush.msrb.mxu3 %v826_v27 }
  0x6b   :  { %887 = vmatpush.msrb.mxu3 %v825_v57 }
  0x6d   :  { %888 = vmatpush.msrb.mxu3 %v824_v59 }
  0x6f   :  { %618 = vmatmul.f32.gmra.mxu2 %v1231_v63  ;;  %889 = vmatpush.msrb.mxu3 %v823_v62 }
  0x71   :  { %890 = vmatpush.msrb.mxu3 %v822_v1 }
  0x77   :  { %621 = vmatmul.f32.gmra.mxu2 %v1234_v2 }
  0x7f   :  { %624 = vmatmul.f32.gmra.mxu2 %v1235_v7 }
  0x87   :  { %627 = vmatmul.f32.gmra.mxu2 %v1238_v13 }
  0x8f   :  { %630 = vmatmul.f32.gmra.mxu2 %v1239_v19 }
  0x93   :  { %v728_v19 = vpop.permute.xlu0 %727 }
  0x95   :  { %v748_v51 = vpop.permute.xlu2 %747 }
  0x97   :  { %633 = vmatmul.f32.gmra.mxu2 %v1242_v24 }
  0x9b   :  { %v733_v29 = vpop.permute.xlu0 %732 }
  0x9d   :  { %v753_v56 = vpop.permute.xlu2 %752 }
  0x9f   :  { %636 = vmatmul.f32.gmra.mxu2 %v1243_v31 }
  0xa3   :  { %v758_v62 = vpop.permute.xlu0 %757 }
  0xa7   :  { %639 = vmatmul.f32.gmra.mxu2 %v1246_v38 }
  0xab   :  { %v738_v38 = vpop.permute.xlu1 %737 }
  0xaf   :  { %642 = vmatmul.f32.gmra.mxu2 %v1247_v33 }
  0xb3   :  { %v743_v33 = vpop.permute.xlu1 %742 }
  0xb4   :  { %v232_v54 = vpop.f32.mrf.mxu0 }
  0xb5   :  { %v233_v55 = vadd.f32 %v1915_v32, %v232_v54 }
  0xb6   :  { %v244_v8 = vpop.f32.mrf.mxu1 }
  0xb7   :  { %v280_v58 = vmax.f32 %v233_v55, 0.0  ;;  %645 = vmatmul.f32.gmra.mxu2 %v1250_v52  ;;  %v245_v14 = vadd.f32 %v1915_v32, %v244_v8 }
  0xb9   :  { %315 = vmatmul.f32.vlgmr.msrb.gmra.mxu1 %v280_v58  ;;  %v284_v17 = vmax.f32 %v245_v14, 0.0 }
  0xba   :  { %v256_v60 = vpop.f32.mrf.mxu2 }
  0xbb   :  { %v257_v46 = vadd.f32 %v1915_v32, %v256_v60 }
  0xbc   :  { %v235_v63 = vpop.f32.mrf.mxu0 }
  0xbd   :  { %v236_v0 = vadd.f32 %v1915_v32, %v235_v63  ;;  %v288_v49 = vmax.f32 %v257_v46, 0.0 }
  0xbe   :  { %v247_v16 = vpop.f32.mrf.mxu1 }
  0xbf   :  { %v281_v2 = vmax.f32 %v236_v0, 0.0  ;;  %648 = vmatmul.f32.gmra.mxu2 %v1251_v61  ;;  %v248_v20 = vadd.f32 %v1915_v32, %v247_v16 }
  0xc1   :  { %318 = vmatmul.f32.gmra.mxu1 %v281_v2  ;;  %v285_v24 = vmax.f32 %v248_v20, 0.0 }
  0xc2   :  { %v259_v3 = vpop.f32.mrf.mxu2 }
  0xc3   :  { %v260_v53 = vadd.f32 %v1915_v32, %v259_v3  ;;  %v763_v3 = vpop.permute.xlu1 %762 }
  0xc4   :  { %v238_v5 = vpop.f32.mrf.mxu0 }
  0xc5   :  { %v239_v6 = vadd.f32 %v1915_v32, %v238_v5  ;;  %v289_v27 = vmax.f32 %v260_v53, 0.0  ;;  %v845_v53 = vld [vmem:[#allocation11 + $0x30] sm:$0xff] }
  0xc6   :  { %v250_v23 = vpop.f32.mrf.mxu1 }
  0xc7   :  { %v282_v7 = vmax.f32 %v239_v6, 0.0  ;;  %651 = vmatmul.f32.gmra.mxu2 %v1254_v4  ;;  %v251_v28 = vadd.f32 %v1915_v32, %v250_v23 }
  0xc9   :  { %321 = vmatmul.f32.gmra.mxu1 %v282_v7  ;;  %v286_v35 = vmax.f32 %v251_v28, 0.0  ;;  %v768_v7 = vpop.permute.xlu2 %767 }
  0xca   :  { %v262_v9 = vpop.f32.mrf.mxu2 }
  0xcb   :  { %v263_v58 = vadd.f32 %v1915_v32, %v262_v9  ;;  %v778_v20 = vpop.permute.xlu1 %777 }
  0xcc   :  { %v241_v11 = vpop.f32.mrf.mxu0 }
  0xcd   :  { %v242_v12 = vadd.f32 %v1915_v32, %v241_v11  ;;  %v290_v61 = vmax.f32 %v263_v58, 0.0  ;;  %v773_v11 = vpop.permute.xlu0 %772  ;;  %v844_v58 = vld [vmem:[#allocation11 + $0x28] sm:$0xff] }
  0xce   :  { %v253_v37 = vpop.f32.mrf.mxu1 }
  0xcf   :  { %v283_v13 = vmax.f32 %v242_v12, 0.0  ;;  %654 = vmatmul.f32.gmra.mxu2 %v1255_v10  ;;  %v254_v39 = vadd.f32 %v1915_v32, %v253_v37  ;;  %v850_v37 = vld [vmem:[#allocation11 + $0x58] sm:$0xff] }
  0xd1   :  { %324 = vmatmul.f32.gmra.mxu1 %v283_v13  ;;  %v287_v43 = vmax.f32 %v254_v39, 0.0  ;;  %v268_v13 = vpop.f32.mrf.mxu3  ;;  %v849_v39 = vld [vmem:[#allocation11 + $0x50] sm:$0xff] }
  0xd2   :  { %v265_v15 = vpop.f32.mrf.mxu2 }
  0xd3   :  { %v266_v0 = vadd.f32 %v1915_v32, %v265_v15  ;;  %v269_v15 = vadd.f32 %v1915_v32, %v268_v13 }
  0xd5   :  { %v291_v25 = vmax.f32 %v266_v0, 0.0  ;;  %v841_v0 = vld [vmem:[#allocation11 + $0x10] sm:$0xff] }
  0xd9   :  { %327 = vmatmul.f32.gmra.mxu1 %v284_v17  ;;  %v292_v17 = vmax.f32 %v269_v15, 0.0 }
  0xda   :  { %v610_v21 = vpop.f32.mrf.mxu2 }
  0xdb   :  { %v1924_v22 = vmul.f32 %v728_v19, %v610_v21  ;;  %v854_v19 = vld [vmem:[#allocation11 + $0x78] sm:$0xff]  ;;  %v853_v21 = vld [vmem:[#allocation11 + $0x70] sm:$0xff] }
  0xdc   :  { %959 = vmatpush.msrb.mxu0 %v854_v19 }
  0xdd   :  { %v856_v26 = vand.u32 2147483647, %v1924_v22 }
  0xde   :  { %960 = vmatpush.msrb.mxu0 %v853_v21 }
  0xdf   :  { %891 = vmatmul.f32.vlgmr.msrb.gmra.mxu3 %v856_v26 }
  0xe1   :  { %330 = vmatmul.f32.gmra.mxu1 %v285_v24  ;;  %v271_v24 = vpop.f32.mrf.mxu3 }
  0xe2   :  { %v613_v31 = vpop.f32.mrf.mxu2  ;;  %v272_v28 = vadd.f32 %v1915_v32, %v271_v24 }
  0xe3   :  { %v1928_v34 = vmul.f32 %v733_v29, %v613_v31  ;;  %v852_v29 = vld [vmem:[#allocation11 + $0x68] sm:$0xff] }
  0xe4   :  { %961 = vmatpush.msrb.mxu0 %v852_v29 }
  0xe5   :  { %v857_v36 = vand.u32 2147483647, %v1928_v34 }
  0xe7   :  { %894 = vmatmul.f32.gmra.mxu3 %v857_v36  ;;  %v851_v36 = vld [vmem:[#allocation11 + $0x60] sm:$0xff] }
  0xe8   :  { %962 = vmatpush.msrb.mxu0 %v851_v36 }
  0xe9   :  { %333 = vmatmul.f32.gmra.mxu1 %v286_v35  ;;  %v293_v35 = vmax.f32 %v272_v28, 0.0 }
  0xea   :  { %v616_v40 = vpop.f32.mrf.mxu2  ;;  %963 = vmatpush.msrb.mxu0 %v850_v37 }
  0xeb   :  { %v1932_v41 = vmul.f32 %v738_v38, %v616_v40  ;;  %v783_v38 = vpop.permute.xlu2 %782 }
  0xec   :  { %964 = vmatpush.msrb.mxu0 %v849_v39 }
  0xed   :  { %v858_v44 = vand.u32 2147483647, %v1932_v41 }
  0xef   :  { %897 = vmatmul.f32.gmra.mxu3 %v858_v44 }
  0xf1   :  { %336 = vmatmul.f32.gmra.mxu1 %v287_v43  ;;  %v274_v43 = vpop.f32.mrf.mxu3 }
  0xf2   :  { %v619_v45 = vpop.f32.mrf.mxu2 }
  0xf3   :  { %v1936_v47 = vmul.f32 %v743_v33, %v619_v45  ;;  %v275_v33 = vadd.f32 %v1915_v32, %v274_v43  ;;  %v848_v45 = vld [vmem:[#allocation11 + $0x48] sm:$0xff] }
  0xf4   :  { %965 = vmatpush.msrb.mxu0 %v848_v45 }
  0xf5   :  { %v859_v48 = vand.u32 2147483647, %v1936_v47 }
  0xf7   :  { %900 = vmatmul.f32.gmra.mxu3 %v859_v48  ;;  %v294_v48 = vmax.f32 %v275_v33, 0.0 }
  0xf9   :  { %339 = vmatmul.f32.gmra.mxu1 %v288_v49  ;;  %v847_v49 = vld [vmem:[#allocation11 + $0x40] sm:$0xff] }
  0xfa   :  { %v622_v52 = vpop.f32.mrf.mxu2  ;;  %966 = vmatpush.msrb.mxu0 %v847_v49 }
  0xfb   :  { %v1940_v54 = vmul.f32 %v748_v51, %v622_v52  ;;  %v846_v51 = vld [vmem:[#allocation11 + $0x38] sm:$0xff]  ;;  %v788_v52 = vpop.permute.xlu0 %787 }
  0xfc   :  { %967 = vmatpush.msrb.mxu0 %v846_v51 }
  0xfd   :  { %v860_v55 = vand.u32 2147483647, %v1940_v54 }
  0xfe   :  { %968 = vmatpush.msrb.mxu0 %v845_v53 }
  0xff   :  { %903 = vmatmul.f32.gmra.mxu3 %v860_v55 }
 0x100   :  { %969 = vmatpush.msrb.mxu0 %v844_v58 }
 0x101   :  { %342 = vmatmul.f32.gmra.mxu1 %v289_v27  ;;  %v277_v27 = vpop.f32.mrf.mxu3 }
 0x102   :  { %v625_v57 = vpop.f32.mrf.mxu2 }
 0x103   :  { %v1944_v59 = vmul.f32 %v753_v56, %v625_v57  ;;  %v278_v57 = vadd.f32 %v1915_v32, %v277_v27 }
 0x105   :  { %v861_v60 = vand.u32 2147483647, %v1944_v59 }
 0x107   :  { %906 = vmatmul.f32.gmra.mxu3 %v861_v60 }
 0x109   :  { %345 = vmatmul.f32.gmra.mxu1 %v290_v61  ;;  %v295_v61 = vmax.f32 %v278_v57, 0.0 }
 0x10a   :  { %v628_v63 = vpop.f32.mrf.mxu2 }
 0x10b   :  { %v1948_v1 = vmul.f32 %v758_v62, %v628_v63  ;;  %v843_v62 = vld [vmem:[#allocation11 + $0x20] sm:$0xff]  ;;  %v842_v63 = vld [vmem:[#allocation11 + $0x18] sm:$0xff] }
 0x10c   :  { %970 = vmatpush.msrb.mxu0 %v843_v62 }
 0x10d   :  { %v862_v2 = vand.u32 2147483647, %v1948_v1 }
 0x10e   :  { %971 = vmatpush.msrb.mxu0 %v842_v63 }
 0x10f   :  { %909 = vmatmul.f32.gmra.mxu3 %v862_v2  ;;  %v793_v2 = vpop.permute.xlu1 %792 }
 0x110   :  { %972 = vmatpush.msrb.mxu0 %v841_v0 }
 0x111   :  { %348 = vmatmul.f32.gmra.mxu1 %v291_v25 }
 0x112   :  { %v631_v4 = vpop.f32.mrf.mxu2 }
 0x113   :  { %v1951_v5 = vmul.f32 %v763_v3, %v631_v4  ;;  %v840_v4 = vld [vmem:[#allocation11 + $0x8] sm:$0xff] }
 0x114   :  { %973 = vmatpush.msrb.mxu0 %v840_v4 }
 0x115   :  { %v863_v6 = vand.u32 2147483647, %v1951_v5 }
 0x117   :  { %912 = vmatmul.f32.gmra.mxu3 %v863_v6  ;;  %v839_v6 = vld [vmem:[#allocation11] sm:$0xff] }
 0x118   :  { %974 = vmatpush.msrb.mxu0 %v839_v6 }
 0x119   :  { %351 = vmatmul.f32.gmra.mxu1 %v292_v17  ;;  %v1985_v17 = vld [vmem:[%s2187_s10] ss:$0 sm:$0xff] }
 0x11a   :  { %v634_v8 = vpop.f32.mrf.mxu2 }
 0x11b   :  { %v1954_v9 = vmul.f32 %v768_v7, %v634_v8  ;;  %v798_v7 = vpop.permute.xlu2 %797 }
 0x11d   :  { %v864_v10 = vand.u32 2147483647, %v1954_v9 }
 0x11f   :  { %915 = vmatmul.f32.gmra.mxu3 %v864_v10 }
 0x121   :  { %354 = vmatmul.f32.gmra.mxu1 %v293_v35 }
 0x122   :  { %v637_v12 = vpop.f32.mrf.mxu2 }
 0x123   :  { %v1957_v14 = vmul.f32 %v773_v11, %v637_v12  ;;  %v803_v12 = vpop.permute.xlu0 %802 }
 0x125   :  { %v865_v16 = vand.u32 2147483647, %v1957_v14 }
 0x127   :  { %918 = vmatmul.f32.gmra.mxu3 %v865_v16 }
 0x129   :  { %357 = vmatmul.f32.gmra.mxu1 %v294_v48 }
 0x12a   :  { %v640_v23 = vpop.f32.mrf.mxu2 }
 0x12b   :  { %v1961_v26 = vmul.f32 %v778_v20, %v640_v23 }
 0x12d   :  { %v866_v31 = vand.u32 2147483647, %v1961_v26 }
 0x12f   :  { %921 = vmatmul.f32.gmra.mxu3 %v866_v31 }
 0x131   :  { %360 = vmatmul.f32.gmra.mxu1 %v295_v61 }
 0x132   :  { %v643_v40 = vpop.f32.mrf.mxu2 }
 0x133   :  { %v1965_v44 = vmul.f32 %v783_v38, %v643_v40 }
 0x135   :  { %v867_v46 = vand.u32 2147483647, %v1965_v44 }
 0x136   :  { %v316_v63 = vpop.f32.mrf.mxu1 }
 0x137   :  { %924 = vmatmul.f32.gmra.mxu3 %v867_v46 }
 0x13a   :  { %v646_v55 = vpop.f32.mrf.mxu2 }
 0x13b   :  { %v1969_v56 = vmul.f32 %v788_v52, %v646_v55 }
 0x13d   :  { %v868_v60 = vand.u32 2147483647, %v1969_v56 }
 0x13e   :  { %v319_v6 = vpop.f32.mrf.mxu1 }
 0x13f   :  { %927 = vmatmul.f32.gmra.mxu3 %v868_v60 }
 0x142   :  { %v649_v25 = vpop.f32.mrf.mxu2 }
 0x143   :  { %v1973_v3 = vmul.f32 %v793_v2, %v649_v25 }
 0x145   :  { %v869_v32 = vand.u32 2147483647, %v1973_v3 }
 0x147   :  { %930 = vmatmul.f32.gmra.mxu3 %v869_v32 }
 0x14a   :  { %v652_v8 = vpop.f32.mrf.mxu2 }
 0x14b   :  { %v1976_v10 = vmul.f32 %v798_v7, %v652_v8 }
 0x14d   :  { %v870_v11 = vand.u32 2147483647, %v1976_v10 }
 0x14f   :  { %933 = vmatmul.f32.gmra.mxu3 %v870_v11 }
 0x152   :  { %v655_v13 = vpop.f32.mrf.mxu2 }
 0x153   :  { %v1979_v15 = vmul.f32 %v803_v12, %v655_v13  ;;  %v322_v13 = vpop.f32.mrf.mxu1 }
 0x155   :  { %v871_v16 = vand.u32 2147483647, %v1979_v15 }
 0x157   :  { %936 = vmatmul.f32.gmra.mxu3 %v871_v16 }
 0x162   :  { %v892_v19 = vpop.f32.mrf.mxu3 }
 0x163   :  { %v893_v20 = vadd.f32 %v1985_v17, %v892_v19 }
 0x165   :  { %v940_v21 = vmax.f32 %v893_v20, 0.0 }
 0x167   :  { %975 = vmatmul.f32.vlgmr.msrb.gmra.mxu0 %v940_v21  ;;  %v2004_v21 = vld [vmem:[%s2184_s7] ss:$0 sm:$0xff] }
 0x16a   :  { %v895_v23 = vpop.f32.mrf.mxu3 }
 0x16b   :  { %v896_v24 = vadd.f32 %v1985_v17, %v895_v23  ;;  %v325_v23 = vpop.f32.mrf.mxu1 }
 0x16d   :  { %v941_v28 = vmax.f32 %v896_v24, 0.0  ;;  %v317_v24 = vadd.f32 %v2004_v21, %v316_v63  ;;  %v2021_v63 = vld [vmem:[%s2180_s3] ss:$0 sm:$0xff] }
 0x16f   :  { %978 = vmatmul.f32.gmra.mxu0 %v941_v28 }
 0x172   :  { %v898_v29 = vpop.f32.mrf.mxu3 }
 0x173   :  { %v899_v31 = vadd.f32 %v1985_v17, %v898_v29 }
 0x175   :  { %v942_v35 = vmax.f32 %v899_v31, 0.0  ;;  %v364_v31 = vsub.f32 0.0, %v317_v24  ;;  %v2030_v24 = vld [vmem:[%s2185_s8] ss:$0 sm:$0xff] }
 0x177   :  { %981 = vmatmul.f32.gmra.mxu0 %v942_v35 }
 0x17a   :  { %v901_v36 = vpop.f32.mrf.mxu3 }
 0x17b   :  { %v902_v37 = vadd.f32 %v1985_v17, %v901_v36  ;;  %v380_v36 = vmul.f32 1.442695, %v364_v31  ;;  %v448_v31 = vmul.f32 %v2021_v63, %v1816_v30 }
 0x17d   :  { %v943_v38 = vmax.f32 %v902_v37, 0.0  ;;  %v320_v37 = vadd.f32 %v2004_v21, %v319_v6  ;;  %1331 = vpow2.f32 %v380_v36 }
 0x17f   :  { %984 = vmatmul.f32.gmra.mxu0 %v943_v38  ;;  %v328_v38 = vpop.f32.mrf.mxu1 }
 0x182   :  { %v904_v39 = vpop.f32.mrf.mxu3 }
 0x183   :  { %v905_v40 = vadd.f32 %v1985_v17, %v904_v39 }
 0x185   :  { %v944_v43 = vmax.f32 %v905_v40, 0.0 }
 0x187   :  { %987 = vmatmul.f32.gmra.mxu0 %v944_v43  ;;  %v365_v43 = vsub.f32 0.0, %v320_v37 }
 0x18a   :  { %v907_v33 = vpop.f32.mrf.mxu3 }
 0x18b   :  { %v908_v45 = vadd.f32 %v1985_v17, %v907_v33 }
 0x18d   :  { %v945_v46 = vmax.f32 %v908_v45, 0.0  ;;  %v382_v45 = vmul.f32 1.442695, %v365_v43  ;;  %v1107_v43 = vmul.f32 %v2030_v24, %v1924_v22 }
 0x18f   :  { %990 = vmatmul.f32.gmra.mxu0 %v945_v46  ;;  %v323_v46 = vadd.f32 %v2004_v21, %v322_v13  ;;  %1333 = vpow2.f32 %v382_v45 }
 0x192   :  { %v910_v48 = vpop.f32.mrf.mxu3 }
 0x193   :  { %v911_v49 = vadd.f32 %v1985_v17, %v910_v48  ;;  %v2014_v48 = vld [vmem:[%s2189_s12] ss:$0 sm:$0xff] }
 0x195   :  { %v946_v51 = vmax.f32 %v911_v49, 0.0  ;;  %v1332_v49 = vpop.eup %1331 }
 0x197   :  { %993 = vmatmul.f32.gmra.mxu0 %v946_v51  ;;  %v331_v51 = vpop.f32.mrf.mxu1 }
 0x198   :  { %v332_v45 = vadd.f32 %v2004_v21, %v331_v51  ;;  %v449_v51 = vmul.f32 %v2021_v63, %v1856_v42 }
 0x19a   :  { %v913_v52 = vpop.f32.mrf.mxu3 }
 0x19b   :  { %v914_v53 = vadd.f32 %v1985_v17, %v913_v52 }
 0x19d   :  { %v947_v55 = vmax.f32 %v914_v53, 0.0  ;;  %v366_v53 = vsub.f32 0.0, %v323_v46 }
 0x19f   :  { %996 = vmatmul.f32.gmra.mxu0 %v947_v55 }
 0x1a2   :  { %v916_v27 = vpop.f32.mrf.mxu3 }
 0x1a3   :  { %v917_v57 = vadd.f32 %v1985_v17, %v916_v27 }
 0x1a5   :  { %v948_v58 = vmax.f32 %v917_v57, 0.0  ;;  %v384_v57 = vmul.f32 1.442695, %v366_v53 }
 0x1a7   :  { %999 = vmatmul.f32.gmra.mxu0 %v948_v58  ;;  %v326_v58 = vadd.f32 %v2004_v21, %v325_v23 }
 0x1aa   :  { %v919_v60 = vpop.f32.mrf.mxu3 }
 0x1ab   :  { %v920_v61 = vadd.f32 %v1985_v17, %v919_v60 }
 0x1ad   :  { %v949_v62 = vmax.f32 %v920_v61, 0.0  ;;  %v1334_v61 = vpop.eup %1333 }
 0x1af   :  { %1002 = vmatmul.f32.gmra.mxu0 %v949_v62 }
 0x1b2   :  { %v922_v0 = vpop.f32.mrf.mxu3 }
 0x1b3   :  { %v923_v2 = vadd.f32 %v1985_v17, %v922_v0  ;;  %v367_v0 = vsub.f32 0.0, %v326_v58 }
 0x1b5   :  { %v950_v25 = vmax.f32 %v923_v2, 0.0 }
 0x1b7   :  { %1005 = vmatmul.f32.gmra.mxu0 %v950_v25  ;;  %v413_v25 = vadd.f32 1.0, %v1334_v61 }
 0x1ba   :  { %v925_v4 = vpop.f32.mrf.mxu3 }
 0x1bb   :  { %v926_v32 = vadd.f32 %v1985_v17, %v925_v4  ;;  %v334_v4 = vpop.f32.mrf.mxu1 }
 0x1bd   :  { %v951_v7 = vmax.f32 %v926_v32, 0.0  ;;  %v447_v32 = vmul.f32 %v2021_v63, %v1768_v18 }
 0x1bf   :  { %1008 = vmatmul.f32.gmra.mxu0 %v951_v7 }
 0x1c2   :  { %v928_v8 = vpop.f32.mrf.mxu3 }
 0x1c3   :  { %v929_v11 = vadd.f32 %v1985_v17, %v928_v8 }
 0x1c5   :  { %v952_v12 = vmax.f32 %v929_v11, 0.0  ;;  %v386_v11 = vmul.f32 1.442695, %v367_v0 }
 0x1c7   :  { %1011 = vmatmul.f32.gmra.mxu0 %v952_v12  ;;  %v329_v12 = vadd.f32 %v2004_v21, %v328_v38 }
 0x1c9   :  { %v368_v18 = vsub.f32 0.0, %v329_v12 }
 0x1ca   :  { %v931_v16 = vpop.f32.mrf.mxu3 }
 0x1cb   :  { %v932_v19 = vadd.f32 %v1985_v17, %v931_v16 }
 0x1cd   :  { %v953_v20 = vmax.f32 %v932_v19, 0.0 }
 0x1cf   :  { %1014 = vmatmul.f32.gmra.mxu0 %v953_v20 }
 0x1d2   :  { %v934_v28 = vpop.f32.mrf.mxu3 }
 0x1d3   :  { %v935_v29 = vadd.f32 %v1985_v17, %v934_v28 }
 0x1d5   :  { %v954_v35 = vmax.f32 %v935_v29, 0.0 }
 0x1d7   :  { %1017 = vmatmul.f32.gmra.mxu0 %v954_v35  ;;  %v1459_v35 = vld [vmem:[%s2178_s1] sm:$0xff] }
 0x1da   :  { %v937_v39 = vpop.f32.mrf.mxu3 }
 0x1db   :  { %v938_v40 = vadd.f32 %v1985_v17, %v937_v39  ;;  %v412_v17 = vadd.f32 1.0, %v1332_v49  ;;  %v337_v39 = vpop.f32.mrf.mxu1 }
 0x1dd   :  { %v955_v33 = vmax.f32 %v938_v40, 0.0  ;;  %1335 = vrcp.f32 %v412_v17 }
 0x1df   :  { %1020 = vmatmul.f32.gmra.mxu0 %v955_v33  ;;  %v388_v33 = vmul.f32 1.442695, %v368_v18 }
 0x1e3   :  { %v1336_v7 = vpop.eup %1335  ;;  %v340_v42 = vpop.f32.mrf.mxu1 }
 0x1e4   :  { %v976_v52 = vpop.f32.mrf.mxu0  ;;  %v463_v20 = vmul.f32 %v1336_v7, %v447_v32  ;;  %v1108_v7 = vmul.f32 %v2030_v24, %v1928_v34 }
 0x1e5   :  { %v977_v55 = vadd.f32 %v2014_v48, %v976_v52 }
 0x1e6   :  { %v479_v36 = vadd.f32 %v1459_v35, %v463_v20 }
 0x1e7   :  { %v1024_v27 = vsub.f32 0.0, %v977_v55 }
 0x1e8   :  { %v495_v53 = vadd.f32 %v1459_v35, %v479_v36  ;;  %v450_v35 = vmul.f32 %v2021_v63, %v1878_v50  ;;  %v1461_v36 = vld [vmem:[%s2178_s1 + $0x10] sm:$0xff] }
 0x1e9   :  { %v1040_v60 = vmul.f32 1.442695, %v1024_v27 }
 0x1eb   :  { %1337 = vpow2.f32 %v1040_v60 }
 0x1ec   :  { %v979_v62 = vpop.f32.mrf.mxu0  ;;  %1339 = vpow2.f32 %v384_v57  ;;  %v369_v57 = vsub.f32 0.0, %v332_v45  ;;  %v1109_v45 = vmul.f32 %v2030_v24, %v1932_v41 }
 0x1ed   :  { %v980_v2 = vadd.f32 %v2014_v48, %v979_v62  ;;  %1341 = vrcp.f32 %v413_v25  ;;  %v1460_v62 = vld [vmem:[%s2178_s1 + $0x8] sm:$0xff] }
 0x1ef   :  { %v1025_v6 = vsub.f32 0.0, %v980_v2 }
 0x1f1   :  { %v1338_v8 = vpop.eup %1337  ;;  %v1042_v13 = vmul.f32 1.442695, %v1025_v6 }
 0x1f2   :  { %v1072_v16 = vadd.f32 1.0, %v1338_v8  ;;  %v1340_v19 = vpop.eup %1339  ;;  %v390_v8 = vmul.f32 1.442695, %v369_v57 }
 0x1f3   :  { %1343 = vpow2.f32 %v1042_v13  ;;  %v414_v29 = vadd.f32 1.0, %v1340_v19  ;;  %v1342_v38 = vpop.eup %1341 }
 0x1f4   :  { %1345 = vrcp.f32 %v1072_v16  ;;  %v982_v23 = vpop.f32.mrf.mxu0  ;;  %v464_v55 = vmul.f32 %v1342_v38, %v448_v31 }
 0x1f5   :  { %1347 = vpow2.f32 %v386_v11  ;;  %v983_v28 = vadd.f32 %v2014_v48, %v982_v23 }
 0x1f6   :  { %1349 = vrcp.f32 %v414_v29  ;;  %v480_v0 = vadd.f32 %v1460_v62, %v464_v55 }
 0x1f7   :  { %v1026_v37 = vsub.f32 0.0, %v983_v28 }
 0x1f8   :  { %v496_v19 = vadd.f32 %v1460_v62, %v480_v0  ;;  %v1463_v0 = vld [vmem:[%s2178_s1 + $0x18] sm:$0xff] }
 0x1f9   :  { %v1344_v40 = vpop.eup %1343  ;;  %v1044_v46 = vmul.f32 1.442695, %v1026_v37 }
 0x1fa   :  { %v1346_v49 = vpop.eup %1345  ;;  %v1073_v52 = vadd.f32 1.0, %v1344_v40 }
 0x1fb   :  { %v1348_v30 = vpop.eup %1347  ;;  %v1123_v17 = vmul.f32 %v1346_v49, %v1107_v43  ;;  %1351 = vpow2.f32 %v1044_v46 }
 0x1fc   :  { %1353 = vrcp.f32 %v1073_v52  ;;  %v985_v27 = vpop.f32.mrf.mxu0  ;;  %v415_v61 = vadd.f32 1.0, %v1348_v30  ;;  %v1350_v32 = vpop.eup %1349 }
 0x1fd   :  { %1355 = vpow2.f32 %v388_v33  ;;  %v1139_v58 = vadd.f32 %v1123_v17, %v1924_v22  ;;  %v986_v60 = vadd.f32 %v2014_v48, %v985_v27  ;;  %v335_v22 = vadd.f32 %v2004_v21, %v334_v4  ;;  %v343_v27 = vpop.f32.mrf.mxu1 }
 0x1fe   :  { %1357 = vrcp.f32 %v415_v61  ;;  %v465_v20 = vmul.f32 %v1350_v32, %v449_v51  ;;  %v1462_v51 = vld [vmem:[%s2178_s1 + $0x20] sm:$0xff] }
 0x1ff   :  { %v1171_v2 = vadd.f32 %v1139_v58, %v495_v53  ;;  %v1027_v25 = vsub.f32 0.0, %v986_v60  ;;  %v370_v28 = vsub.f32 0.0, %v335_v22  ;;  %v451_v62 = vmul.f32 %v1462_v51, %v2021_v63 }
 0x200   :  { %v481_v37 = vadd.f32 %v1461_v36, %v465_v20  ;;  %v341_v22 = vadd.f32 %v2004_v21, %v340_v42 }
 0x201   :  { %v1352_v6 = vpop.eup %1351  ;;  %1187 = vst [vmem:[#allocation12] sm:$0xff] %v1171_v2  ;;  %v1046_v11 = vmul.f32 1.442695, %v1027_v25  ;;  %v392_v46 = vmul.f32 1.442695, %v370_v28 }
 0x202   :  { %v1354_v12 = vpop.eup %1353  ;;  %v1074_v13 = vadd.f32 1.0, %v1352_v6  ;;  %v497_v53 = vadd.f32 %v1461_v36, %v481_v37  ;;  %v372_v28 = vsub.f32 0.0, %v341_v22 }
 0x203   :  { %v1356_v16 = vpop.eup %1355  ;;  %v1124_v23 = vmul.f32 %v1354_v12, %v1108_v7  ;;  %1359 = vpow2.f32 %v1046_v11 }
 0x204   :  { %1361 = vrcp.f32 %v1074_v13  ;;  %v988_v18 = vpop.f32.mrf.mxu0  ;;  %v416_v4 = vadd.f32 1.0, %v1356_v16  ;;  %v1358_v43 = vpop.eup %1357 }
 0x205   :  { %1363 = vpow2.f32 %v390_v8  ;;  %v1140_v29 = vadd.f32 %v1124_v23, %v1928_v34  ;;  %v989_v31 = vadd.f32 %v2014_v48, %v988_v18  ;;  %v338_v34 = vadd.f32 %v2004_v21, %v337_v39  ;;  %v346_v42 = vpop.f32.mrf.mxu1 }
 0x206   :  { %1365 = vrcp.f32 %v416_v4  ;;  %v466_v55 = vmul.f32 %v1358_v43, %v450_v35  ;;  %v1464_v35 = vld [vmem:[%s2178_s1 + $0x28] sm:$0xff] }
 0x207   :  { %v1172_v38 = vadd.f32 %v1140_v29, %v496_v19  ;;  %v1028_v40 = vsub.f32 0.0, %v989_v31  ;;  %v371_v58 = vsub.f32 0.0, %v338_v34  ;;  %v452_v36 = vmul.f32 %v1464_v35, %v2021_v63 }
 0x208   :  { %v482_v2 = vadd.f32 %v1463_v0, %v466_v55 }
 0x209   :  { %v1360_v33 = vpop.eup %1359  ;;  %1188 = vst [vmem:[#allocation12 + $0x8] sm:$0xff] %v1172_v38  ;;  %v1048_v49 = vmul.f32 1.442695, %v1028_v40  ;;  %v394_v8 = vmul.f32 1.442695, %v371_v58 }
 0x20a   :  { %v1362_v52 = vpop.eup %1361  ;;  %v1075_v50 = vadd.f32 1.0, %v1360_v33  ;;  %v498_v19 = vadd.f32 %v1463_v0, %v482_v2 }
 0x20b   :  { %v1364_v30 = vpop.eup %1363  ;;  %v1125_v17 = vmul.f32 %v1362_v52, %v1109_v45  ;;  %1367 = vpow2.f32 %v1048_v49  ;;  %v1111_v45 = vmul.f32 %v2030_v24, %v1940_v54 }
 0x20c   :  { %1369 = vrcp.f32 %v1075_v50  ;;  %v991_v57 = vpop.f32.mrf.mxu0  ;;  %v417_v39 = vadd.f32 1.0, %v1364_v30  ;;  %v1366_v6 = vpop.eup %1365 }
 0x20d   :  { %1371 = vpow2.f32 %v392_v46  ;;  %v1141_v60 = vadd.f32 %v1125_v17, %v1932_v41  ;;  %v992_v61 = vadd.f32 %v2014_v48, %v991_v57  ;;  %v1110_v41 = vmul.f32 %v2030_v24, %v1936_v47 }
 0x20e   :  { %1373 = vrcp.f32 %v417_v39  ;;  %v467_v20 = vmul.f32 %v1366_v6, %v451_v62  ;;  %v396_v46 = vmul.f32 1.442695, %v372_v28  ;;  %v1112_v6 = vmul.f32 %v2030_v24, %v1944_v59 }
 0x20f   :  { %v1173_v25 = vadd.f32 %v1141_v60, %v497_v53  ;;  %v1029_v32 = vsub.f32 0.0, %v992_v61 }
 0x210   :  { %v483_v37 = vadd.f32 %v1462_v51, %v467_v20 }
 0x211   :  { %v1368_v7 = vpop.eup %1367  ;;  %1189 = vst [vmem:[#allocation12 + $0x10] sm:$0xff] %v1173_v25  ;;  %v1050_v11 = vmul.f32 1.442695, %v1029_v32  ;;  %v349_v25 = vpop.f32.mrf.mxu1 }
 0x212   :  { %v1370_v12 = vpop.eup %1369  ;;  %v1076_v13 = vadd.f32 1.0, %v1368_v7  ;;  %v499_v30 = vadd.f32 %v1462_v51, %v483_v37 }
 0x213   :  { %v1372_v16 = vpop.eup %1371  ;;  %v1126_v23 = vmul.f32 %v1370_v12, %v1110_v41  ;;  %1375 = vpow2.f32 %v1050_v11 }
 0x214   :  { %1377 = vrcp.f32 %v1076_v13  ;;  %v994_v18 = vpop.f32.mrf.mxu0  ;;  %v418_v4 = vadd.f32 1.0, %v1372_v16  ;;  %v1374_v43 = vpop.eup %1373 }
 0x215   :  { %1379 = vpow2.f32 %v394_v8  ;;  %v1142_v29 = vadd.f32 %v1126_v23, %v1936_v47  ;;  %v995_v31 = vadd.f32 %v2014_v48, %v994_v18  ;;  %v344_v47 = vadd.f32 %v2004_v21, %v343_v27  ;;  %v1465_v27 = vld [vmem:[%s2178_s1 + $0x30] sm:$0xff] }
 0x216   :  { %1381 = vrcp.f32 %v418_v4  ;;  %v468_v53 = vmul.f32 %v1374_v43, %v452_v36  ;;  %v453_v39 = vmul.f32 %v1465_v27, %v2021_v63 }
 0x217   :  { %v1174_v38 = vadd.f32 %v1142_v29, %v498_v19  ;;  %v1030_v40 = vsub.f32 0.0, %v995_v31  ;;  %v373_v57 = vsub.f32 0.0, %v344_v47  ;;  %v1466_v29 = vld [vmem:[%s2178_s1 + $0x38] sm:$0xff] }
 0x218   :  { %v484_v62 = vadd.f32 %v1464_v35, %v468_v53  ;;  %v454_v31 = vmul.f32 %v1466_v29, %v2021_v63 }
 0x219   :  { %v1376_v33 = vpop.eup %1375  ;;  %1190 = vst [vmem:[#allocation12 + $0x18] sm:$0xff] %v1174_v38  ;;  %v1052_v34 = vmul.f32 1.442695, %v1030_v40  ;;  %v398_v7 = vmul.f32 1.442695, %v373_v57  ;;  %v352_v37 = vpop.f32.mrf.mxu1  ;;  %v1113_v40 = vmul.f32 %v2030_v24, %v1948_v1 }
 0x21a   :  { %v1378_v49 = vpop.eup %1377  ;;  %v1077_v52 = vadd.f32 1.0, %v1376_v33  ;;  %v500_v12 = vadd.f32 %v1464_v35, %v484_v62 }
 0x21b   :  { %v1380_v50 = vpop.eup %1379  ;;  %v1127_v55 = vmul.f32 %v1378_v49, %v1111_v45  ;;  %1383 = vpow2.f32 %v1052_v34 }
 0x21c   :  { %1385 = vrcp.f32 %v1077_v52  ;;  %v997_v17 = vpop.f32.mrf.mxu0  ;;  %v419_v61 = vadd.f32 1.0, %v1380_v50  ;;  %v1382_v2 = vpop.eup %1381 }
 0x21d   :  { %1387 = vpow2.f32 %v396_v46  ;;  %v1143_v58 = vadd.f32 %v1127_v55, %v1940_v54  ;;  %v998_v60 = vadd.f32 %v2014_v48, %v997_v17  ;;  %v347_v54 = vadd.f32 %v2004_v21, %v346_v42 }
 0x21e   :  { %1389 = vrcp.f32 %v419_v61  ;;  %v469_v13 = vmul.f32 %v1382_v2, %v453_v39 }
 0x21f   :  { %v1175_v51 = vadd.f32 %v1143_v58, %v499_v30  ;;  %v1031_v0 = vsub.f32 0.0, %v998_v60  ;;  %v374_v20 = vsub.f32 0.0, %v347_v54 }
 0x220   :  { %v485_v4 = vadd.f32 %v1465_v27, %v469_v13 }
 0x221   :  { %v1384_v32 = vpop.eup %1383  ;;  %1191 = vst [vmem:[#allocation12 + $0x20] sm:$0xff] %v1175_v51  ;;  %v1054_v41 = vmul.f32 1.442695, %v1031_v0  ;;  %v400_v43 = vmul.f32 1.442695, %v374_v20  ;;  %v1114_v51 = vmul.f32 %v2030_v24, %v1951_v5 }
 0x222   :  { %v1386_v8 = vpop.eup %1385  ;;  %v1078_v22 = vadd.f32 1.0, %v1384_v32  ;;  %v501_v34 = vadd.f32 %v1465_v27, %v485_v4  ;;  %v1467_v27 = vld [vmem:[%s2178_s1 + $0x40] sm:$0xff]  ;;  %v355_v32 = vpop.f32.mrf.mxu1  ;;  %v1115_v4 = vmul.f32 %v2030_v24, %v1954_v9 }
 0x223   :  { %v1388_v11 = vpop.eup %1387  ;;  %v1128_v16 = vmul.f32 %v1386_v8, %v1112_v6  ;;  %1391 = vpow2.f32 %v1054_v41  ;;  %v455_v39 = vmul.f32 %v1467_v27, %v2021_v63 }
 0x224   :  { %1393 = vrcp.f32 %v1078_v22  ;;  %v1000_v19 = vpop.f32.mrf.mxu0  ;;  %v420_v28 = vadd.f32 1.0, %v1388_v11  ;;  %v1390_v36 = vpop.eup %1389 }
 0x225   :  { %1395 = vpow2.f32 %v398_v7  ;;  %v1144_v23 = vadd.f32 %v1128_v16, %v1944_v59  ;;  %v1001_v18 = vadd.f32 %v2014_v48, %v1000_v19  ;;  %v350_v59 = vadd.f32 %v2004_v21, %v349_v25 }
 0x226   :  { %1397 = vrcp.f32 %v420_v28  ;;  %v470_v49 = vmul.f32 %v1390_v36, %v454_v31 }
 0x227   :  { %v1176_v42 = vadd.f32 %v1144_v23, %v500_v12  ;;  %v1032_v35 = vsub.f32 0.0, %v1001_v18  ;;  %v375_v30 = vsub.f32 0.0, %v350_v59  ;;  %v1468_v18 = vld [vmem:[%s2178_s1 + $0x48] sm:$0xff] }
 0x228   :  { %v486_v57 = vadd.f32 %v1466_v29, %v470_v49  ;;  %v456_v28 = vmul.f32 %v1468_v18, %v2021_v63 }
 0x229   :  { %v1392_v38 = vpop.eup %1391  ;;  %1192 = vst [vmem:[#allocation12 + $0x28] sm:$0xff] %v1176_v42  ;;  %v1056_v33 = vmul.f32 1.442695, %v1032_v35  ;;  %v402_v0 = vmul.f32 1.442695, %v375_v30 }
 0x22a   :  { %v1394_v45 = vpop.eup %1393  ;;  %v1079_v46 = vadd.f32 1.0, %v1392_v38  ;;  %v502_v54 = vadd.f32 %v1466_v29, %v486_v57 }
 0x22b   :  { %v1396_v47 = vpop.eup %1395  ;;  %v1129_v52 = vmul.f32 %v1394_v45, %v1113_v40  ;;  %1399 = vpow2.f32 %v1056_v33  ;;  %v358_v33 = vpop.f32.mrf.mxu1 }
 0x22c   :  { %1401 = vrcp.f32 %v1079_v46  ;;  %v1003_v50 = vpop.f32.mrf.mxu0  ;;  %v421_v17 = vadd.f32 1.0, %v1396_v47  ;;  %v1398_v61 = vpop.eup %1397 }
 0x22d   :  { %1403 = vpow2.f32 %v400_v43  ;;  %v1145_v53 = vadd.f32 %v1129_v52, %v1948_v1  ;;  %v1004_v55 = vadd.f32 %v2014_v48, %v1003_v50  ;;  %v353_v1 = vadd.f32 %v2004_v21, %v352_v37 }
 0x22e   :  { %1405 = vrcp.f32 %v421_v17  ;;  %v471_v8 = vmul.f32 %v1398_v61, %v455_v39 }
 0x22f   :  { %v1177_v58 = vadd.f32 %v1145_v53, %v501_v34  ;;  %v1033_v60 = vsub.f32 0.0, %v1004_v55  ;;  %v376_v11 = vsub.f32 0.0, %v353_v1  ;;  %v1469_v53 = vld [vmem:[%s2178_s1 + $0x50] sm:$0xff] }
 0x230   :  { %v487_v29 = vadd.f32 %v1467_v27, %v471_v8  ;;  %v457_v55 = vmul.f32 %v1469_v53, %v2021_v63 }
 0x231   :  { %v1400_v62 = vpop.eup %1399  ;;  %1193 = vst [vmem:[#allocation12 + $0x30] sm:$0xff] %v1177_v58  ;;  %v1058_v2 = vmul.f32 1.442695, %v1033_v60  ;;  %v404_v42 = vmul.f32 1.442695, %v376_v11  ;;  %v1116_v58 = vmul.f32 %v2030_v24, %v1957_v14  ;;  %v1470_v11 = vld [vmem:[%s2178_s1 + $0x58] sm:$0xff] }
 0x232   :  { %v1402_v25 = vpop.eup %1401  ;;  %v1080_v6 = vadd.f32 1.0, %v1400_v62  ;;  %v503_v43 = vadd.f32 %v1467_v27, %v487_v29 }
 0x233   :  { %v1404_v7 = vpop.eup %1403  ;;  %v1130_v41 = vmul.f32 %v1402_v25, %v1114_v51  ;;  %1407 = vpow2.f32 %v1058_v2 }
 0x234   :  { %1409 = vrcp.f32 %v1080_v6  ;;  %v1006_v22 = vpop.f32.mrf.mxu0  ;;  %v422_v16 = vadd.f32 1.0, %v1404_v7  ;;  %v1406_v23 = vpop.eup %1405 }
 0x235   :  { %1411 = vpow2.f32 %v402_v0  ;;  %v1146_v12 = vadd.f32 %v1130_v41, %v1951_v5  ;;  %v1007_v13 = vadd.f32 %v2014_v48, %v1006_v22  ;;  %v356_v5 = vadd.f32 %v2004_v21, %v355_v32 }
 0x236   :  { %1413 = vrcp.f32 %v422_v16  ;;  %v472_v59 = vmul.f32 %v1406_v23, %v456_v28 }
 0x237   :  { %v1178_v19 = vadd.f32 %v1146_v12, %v502_v54  ;;  %v1034_v20 = vsub.f32 0.0, %v1007_v13  ;;  %v377_v46 = vsub.f32 0.0, %v356_v5  ;;  %v361_v54 = vpop.f32.mrf.mxu1  ;;  %v458_v12 = vmul.f32 %v1470_v11, %v2021_v63 }
 0x238   :  { %v488_v17 = vadd.f32 %v1468_v18, %v472_v59 }
 0x239   :  { %v1408_v31 = vpop.eup %1407  ;;  %1194 = vst [vmem:[#allocation12 + $0x38] sm:$0xff] %v1178_v19  ;;  %v1060_v35 = vmul.f32 1.442695, %v1034_v20  ;;  %v406_v60 = vmul.f32 1.442695, %v377_v46  ;;  %v1117_v19 = vmul.f32 %v2030_v24, %v1961_v26 }
 0x23a   :  { %v1410_v36 = vpop.eup %1409  ;;  %v1081_v37 = vadd.f32 1.0, %v1408_v31  ;;  %v504_v0 = vadd.f32 %v1468_v18, %v488_v17 }
 0x23b   :  { %v1412_v38 = vpop.eup %1411  ;;  %v1131_v40 = vmul.f32 %v1410_v36, %v1115_v4  ;;  %1415 = vpow2.f32 %v1060_v35 }
 0x23c   :  { %1417 = vrcp.f32 %v1081_v37  ;;  %v1009_v45 = vpop.f32.mrf.mxu0  ;;  %v423_v49 = vadd.f32 1.0, %v1412_v38  ;;  %v1414_v30 = vpop.eup %1413 }
 0x23d   :  { %1419 = vpow2.f32 %v404_v42  ;;  %v1147_v47 = vadd.f32 %v1131_v40, %v1954_v9  ;;  %v1010_v34 = vadd.f32 %v2014_v48, %v1009_v45  ;;  %v359_v9 = vadd.f32 %v2004_v21, %v358_v33  ;;  %v1471_v45 = vld [vmem:[%s2178_s1 + $0x60] sm:$0xff] }
 0x23e   :  { %1421 = vrcp.f32 %v423_v49  ;;  %v473_v1 = vmul.f32 %v1414_v30, %v457_v55  ;;  %v459_v46 = vmul.f32 %v1471_v45, %v2021_v63 }
 0x23f   :  { %v1179_v52 = vadd.f32 %v1147_v47, %v503_v43  ;;  %v1035_v50 = vsub.f32 0.0, %v1010_v34  ;;  %v378_v25 = vsub.f32 0.0, %v359_v9  ;;  %v1118_v47 = vmul.f32 %v2030_v24, %v1965_v44 }
 0x240   :  { %v489_v13 = vadd.f32 %v1469_v53, %v473_v1 }
 0x241   :  { %v1416_v57 = vpop.eup %1415  ;;  %1195 = vst [vmem:[#allocation12 + $0x40] sm:$0xff] %v1179_v52  ;;  %v1062_v61 = vmul.f32 1.442695, %v1035_v50  ;;  %v408_v20 = vmul.f32 1.442695, %v378_v25 }
 0x242   :  { %v1418_v27 = vpop.eup %1417  ;;  %v1082_v39 = vadd.f32 1.0, %v1416_v57  ;;  %v505_v4 = vadd.f32 %v1469_v53, %v489_v13 }
 0x243   :  { %v1420_v62 = vpop.eup %1419  ;;  %v1132_v51 = vmul.f32 %v1418_v27, %v1116_v58  ;;  %1423 = vpow2.f32 %v1062_v61 }
 0x244   :  { %1425 = vrcp.f32 %v1082_v39  ;;  %v1012_v2 = vpop.f32.mrf.mxu0  ;;  %v424_v7 = vadd.f32 1.0, %v1420_v62  ;;  %v1422_v22 = vpop.eup %1421  ;;  %v1472_v62 = vld [vmem:[%s2178_s1 + $0x68] sm:$0xff] }
 0x245   :  { %1427 = vpow2.f32 %v406_v60  ;;  %v1148_v32 = vadd.f32 %v1132_v51, %v1957_v14  ;;  %v1013_v6 = vadd.f32 %v2014_v48, %v1012_v2  ;;  %v362_v14 = vadd.f32 %v2004_v21, %v361_v54 }
 0x246   :  { %1429 = vrcp.f32 %v424_v7  ;;  %v474_v42 = vmul.f32 %v1422_v22, %v458_v12  ;;  %v460_v51 = vmul.f32 %v1472_v62, %v2021_v63 }
 0x247   :  { %v1180_v41 = vadd.f32 %v1148_v32, %v504_v0  ;;  %v1036_v8 = vsub.f32 0.0, %v1013_v6  ;;  %v379_v35 = vsub.f32 0.0, %v362_v14  ;;  %v1119_v0 = vmul.f32 %v2030_v24, %v1969_v56 }
 0x248   :  { %v490_v59 = vadd.f32 %v1470_v11, %v474_v42 }
 0x249   :  { %v1424_v16 = vpop.eup %1423  ;;  %1196 = vst [vmem:[#allocation12 + $0x48] sm:$0xff] %v1180_v41  ;;  %v1064_v23 = vmul.f32 1.442695, %v1036_v8  ;;  %v410_v34 = vmul.f32 1.442695, %v379_v35 }
 0x24a   :  { %v1426_v18 = vpop.eup %1425  ;;  %v1083_v28 = vadd.f32 1.0, %v1424_v16  ;;  %v506_v53 = vadd.f32 %v1470_v11, %v490_v59 }
 0x24b   :  { %v1428_v29 = vpop.eup %1427  ;;  %v1133_v31 = vmul.f32 %v1426_v18, %v1117_v19  ;;  %1431 = vpow2.f32 %v1064_v23  ;;  %v1120_v23 = vmul.f32 %v2030_v24, %v1973_v3 }
 0x24c   :  { %1433 = vrcp.f32 %v1083_v28  ;;  %v1015_v5 = vpop.f32.mrf.mxu0  ;;  %v425_v38 = vadd.f32 1.0, %v1428_v29  ;;  %v1430_v43 = vpop.eup %1429 }
 0x24d   :  { %1435 = vpow2.f32 %v408_v20  ;;  %v1149_v36 = vadd.f32 %v1133_v31, %v1961_v26  ;;  %v1016_v37 = vadd.f32 %v2014_v48, %v1015_v5  ;;  %v475_v17 = vmul.f32 %v1430_v43, %v459_v46  ;;  %v1473_v20 = vld [vmem:[%s2178_s1 + $0x70] sm:$0xff] }
 0x24e   :  { %1437 = vrcp.f32 %v425_v38  ;;  %v461_v14 = vmul.f32 %v1473_v20, %v2021_v63 }
 0x24f   :  { %v1181_v21 = vadd.f32 %v1149_v36, %v505_v4  ;;  %v1037_v40 = vsub.f32 0.0, %v1016_v37  ;;  %v491_v1 = vadd.f32 %v1471_v45, %v475_v17  ;;  %v1474_v37 = vld [vmem:[%s2178_s1 + $0x78] sm:$0xff]  ;;  %s1637_s1 = smov [#allocation12]  }
 0x250   :  { %v462_v38 = vmul.f32 %v1474_v37, %v2021_v63  ;;  %s1207_s29 = sshll.u32 %s1637_s1, 4  ;;  %s1208_s29 = int_to_ptr.vmem [resolvable:$true] %s1207_s29 }
 0x251   :  { %v1432_v33 = vpop.eup %1431  ;;  %1197 = vst [vmem:[#allocation12 + $0x50] sm:$0xff] %v1181_v21  ;;  %v1066_v26 = vmul.f32 1.442695, %v1037_v40  ;;  %v507_v54 = vadd.f32 %v1471_v45, %v491_v1  ;;  %v1121_v21 = vmul.f32 %v2030_v24, %v1976_v10 }
 0x252   :  { %v1434_v49 = vpop.eup %1433  ;;  %v1084_v52 = vadd.f32 1.0, %v1432_v33 }
 0x253   :  { %v1436_v50 = vpop.eup %1435  ;;  %v1134_v30 = vmul.f32 %v1434_v49, %v1118_v47  ;;  %1439 = vpow2.f32 %v1066_v26 }
 0x254   :  { %1441 = vrcp.f32 %v1084_v52  ;;  %v1018_v55 = vpop.f32.mrf.mxu0  ;;  %v426_v60 = vadd.f32 1.0, %v1436_v50  ;;  %v1438_v27 = vpop.eup %1437 }
 0x255   :  { %1443 = vpow2.f32 %v410_v34  ;;  %v1150_v57 = vadd.f32 %v1134_v30, %v1965_v44  ;;  %v1019_v58 = vadd.f32 %v2014_v48, %v1018_v55  ;;  %v476_v41 = vmul.f32 %v1438_v27, %v460_v51 }
 0x256   :  { %1445 = vrcp.f32 %v426_v60  ;;  %v1122_v34 = vmul.f32 %v2030_v24, %v1979_v15 }
 0x257   :  { %v1182_v9 = vadd.f32 %v1150_v57, %v506_v53  ;;  %v1038_v61 = vsub.f32 0.0, %v1019_v58  ;;  %v492_v18 = vadd.f32 %v1472_v62, %v476_v41 }
 0x259   :  { %v1440_v39 = vpop.eup %1439  ;;  %1198 = vst [vmem:[#allocation12 + $0x58] sm:$0xff] %v1182_v9  ;;  %v1068_v2 = vmul.f32 1.442695, %v1038_v61  ;;  %v508_v31 = vadd.f32 %v1472_v62, %v492_v18 }
 0x25a   :  { %v1442_v44 = vpop.eup %1441  ;;  %v1085_v25 = vadd.f32 1.0, %v1440_v39 }
 0x25b   :  { %v1444_v32 = vpop.eup %1443  ;;  %v1135_v6 = vmul.f32 %v1442_v44, %v1119_v0  ;;  %1447 = vpow2.f32 %v1068_v2 }
 0x25c   :  { %1449 = vrcp.f32 %v1085_v25  ;;  %v1021_v7 = vpop.f32.mrf.mxu0  ;;  %v427_v11 = vadd.f32 1.0, %v1444_v32  ;;  %v1446_v16 = vpop.eup %1445 }
 0x25d   :  { %v1151_v8 = vadd.f32 %v1135_v6, %v1969_v56  ;;  %v1022_v22 = vadd.f32 %v2014_v48, %v1021_v7  ;;  %v477_v4 = vmul.f32 %v1446_v16, %v461_v14 }
 0x25e   :  { %1451 = vrcp.f32 %v427_v11 }
 0x25f   :  { %v1183_v12 = vadd.f32 %v1151_v8, %v507_v54  ;;  %v1039_v13 = vsub.f32 0.0, %v1022_v22  ;;  %v493_v40 = vadd.f32 %v1473_v20, %v477_v4 }
 0x261   :  { %v1448_v19 = vpop.eup %1447  ;;  %1199 = vst [vmem:[#allocation12 + $0x60] sm:$0xff] %v1183_v12  ;;  %v1070_v28 = vmul.f32 1.442695, %v1039_v13  ;;  %v509_v45 = vadd.f32 %v1473_v20, %v493_v40 }
 0x262   :  { %v1450_v56 = vpop.eup %1449  ;;  %v1086_v48 = vadd.f32 1.0, %v1448_v19 }
 0x263   :  { %v1136_v29 = vmul.f32 %v1450_v56, %v1120_v23  ;;  %1453 = vpow2.f32 %v1070_v28 }
 0x264   :  { %1455 = vrcp.f32 %v1086_v48  ;;  %v1452_v35 = vpop.eup %1451 }
 0x265   :  { %v1152_v42 = vadd.f32 %v1136_v29, %v1973_v3  ;;  %v478_v3 = vmul.f32 %v1452_v35, %v462_v38 }
 0x267   :  { %v1184_v5 = vadd.f32 %v1152_v42, %v508_v31  ;;  %v494_v26 = vadd.f32 %v1474_v37, %v478_v3 }
 0x269   :  { %v1454_v36 = vpop.eup %1453  ;;  %1200 = vst [vmem:[#allocation12 + $0x68] sm:$0xff] %v1184_v5  ;;  %v510_v52 = vadd.f32 %v1474_v37, %v494_v26 }
 0x26a   :  { %v1456_v43 = vpop.eup %1455  ;;  %v1087_v59 = vadd.f32 1.0, %v1454_v36 }
 0x26b   :  { %v1137_v33 = vmul.f32 %v1456_v43, %v1121_v21 }
 0x26c   :  { %1457 = vrcp.f32 %v1087_v59 }
 0x26d   :  { %v1153_v46 = vadd.f32 %v1137_v33, %v1976_v10 }
 0x26f   :  { %v1185_v47 = vadd.f32 %v1153_v46, %v509_v45 }
 0x271   :  { %1201 = vst [vmem:[#allocation12 + $0x70] sm:$0xff] %v1185_v47 }
 0x272   :  { %v1458_v63 = vpop.eup %1457 }
 0x273   :  { %v1138_v49 = vmul.f32 %v1458_v63, %v1122_v34 }
 0x275   :  { %v1154_v50 = vadd.f32 %v1138_v49, %v1979_v15 }
 0x277   :  { %v1186_v30 = vadd.f32 %v1154_v50, %v510_v52 }
 0x279   :  { %1202 = vst [vmem:[#allocation12 + $0x78] sm:$0xff] %v1186_v30 }
 0x27a   :  { %1215 = dma.vmem_to_hbm [thread:$0]  %s1208_s29, 2048, %s1210_s14, [#allocation5], %s1628_s16, %s1628_s16, %s1629_s17  }
 0x27b   :  { %1625 = dma.done.wait [#allocation5], 2048  }
 0x27c   :  { %1626 = vsyncadd [#allocation5], 4294965248 }
 0x27d   :  { %1220 = vsyncpa [#allocation4], 1 }
 0x27e   :  { %1221 = vsyncpa [#allocation7], 1 }
 0x27f   :  { %1222 = vsyncpa [#allocation10], 1 }
 0x280   :  { %1223 = vsyncpa [#allocation5], 1 }

</bundles_post_ra>
